<compile_context>
chip_gen: v5e
topology: v5e:2x2
jax: 0.10.0
libtpu: 0.0.40
codegen_flags: <defaults>
</compile_context>

<pallas_src>
import functools

import jax
import jax.numpy as jnp
from jax.experimental import pallas as pl
from jax.experimental.pallas import tpu as pltpu


def _contrastive_loss_tile_kernel(sim_ref, pos_ref, ce_ref, mg_ref, *,
                                  margin, n_rows, block_rows):
    i = pl.program_id(0)

    sim = sim_ref[...].astype(jnp.float32)                 # [TM, N]
    pos = pos_ref[...].astype(jnp.int32)                   # [TM, 1]
    tm, n = sim.shape

    col_ids = jax.lax.broadcasted_iota(jnp.int32, (tm, n), 1)        # [TM, N] lane ids
    local_row = jax.lax.broadcasted_iota(jnp.int32, (tm, 1), 0)      # [TM, 1]
    global_row = local_row + i * block_rows                          # [TM, 1]

    # ---- diagonal value and max-over-negatives (selects, no float masks) ----
    is_diag = col_ids == global_row                                   # [TM, N] bool
    diag = jnp.max(jnp.where(is_diag, sim, -jnp.inf), axis=1, keepdims=True)   # [TM, 1]
    masked = jnp.where(is_diag, sim - jnp.float32(1e9), sim)          # matches torch eye*1e9
    max_neg = jnp.max(masked, axis=1, keepdims=True)                  # [TM, 1]

    # ---- cross entropy (stable); row_max derived, no extra [TM, N] max ----
    row_max = jnp.maximum(max_neg, diag)                              # == max_j sim[i, j]
    shifted = sim - row_max                                           # [TM, N]
    lse = jnp.log(jnp.sum(jnp.exp(shifted), axis=1, keepdims=True))   # [TM, 1]
    target = jnp.sum(jnp.where(col_ids == pos, shifted, 0.0),
                     axis=1, keepdims=True)                           # [TM, 1]
    ce_per_row = lse - target                                         # [TM, 1]
    margin_per_row = jnp.maximum(max_neg - diag + jnp.float32(margin), 0.0)

    # ---- mask padded tail rows (select is robust to garbage / inf / nan) ----
    valid = global_row < n_rows                                       # [TM, 1]
    ce_per_row = jnp.where(valid, ce_per_row, 0.0)
    margin_per_row = jnp.where(valid, margin_per_row, 0.0)

    # lane-dense partial outputs (avoid masked sub-128-lane stores)
    ce_ref[...] = jnp.full(ce_ref.shape, jnp.sum(ce_per_row), dtype=jnp.float32)
    mg_ref[...] = jnp.full(mg_ref.shape, jnp.sum(margin_per_row), dtype=jnp.float32)


def _round_up(x, m):
    return ((x + m - 1) // m) * m


def _choose_block_rows(n, itemsize):
    # Budget ~24 MiB for the double-buffered input tile plus ~4 f32 [TM, N]
    # temporaries; the pallas_call raises the scoped VMEM limit to 48 MiB,
    # which still leaves headroom under v7x's 64 MiB physical VMEM (and is far
    # below v5e/v6e's 128 MiB physical).
    bytes_per_row = n * (2 * itemsize + 4 * 4)
    tm = (24 * 1024 * 1024) // max(bytes_per_row, 1)
    tm = max(8, min(512, (tm // 8) * 8))
    return min(tm, _round_up(n, 8))


def contrastive_loss(similarity, positive_idx, margin=0.5, block_rows=None):
    """similarity: [N, N] float (any fp dtype); positive_idx: [N] or [N, 1] int."""
    if positive_idx.ndim == 1:
        positive_idx = positive_idx[:, None]
    positive_idx = positive_idx.astype(jnp.int32)

    n = similarity.shape[0]
    if block_rows is None:
        block_rows = _choose_block_rows(n, similarity.dtype.itemsize)
    tm = int(block_rows)
    grid = pl.cdiv(n, tm)

    kernel = functools.partial(_contrastive_loss_tile_kernel,
                               margin=float(margin), n_rows=n, block_rows=tm)

    ce_parts, mg_parts = pl.pallas_call(
        kernel,
        grid=(grid,),
        out_shape=(jax.ShapeDtypeStruct((grid, 8, 128), jnp.float32),
                   jax.ShapeDtypeStruct((grid, 8, 128), jnp.float32)),
        in_specs=[
            pl.BlockSpec((tm, n), lambda i: (i, 0)),      # similarity row tile
            pl.BlockSpec((tm, 1), lambda i: (i, 0)),      # targets for those rows
        ],
        out_specs=(
            pl.BlockSpec((1, 8, 128), lambda i: (i, 0, 0)),
            pl.BlockSpec((1, 8, 128), lambda i: (i, 0, 0)),
        ),
        compiler_params=pltpu.CompilerParams(
            dimension_semantics=("parallel",),            # v7x: shard row tiles across both TCs
            vmem_limit_bytes=48 * 1024 * 1024,
        ),
    )(similarity, positive_idx)

    total = ce_parts[:, 0, 0].sum() + mg_parts[:, 0, 0].sum()
    return total / jnp.float32(n)


def _reference(similarity, positive_idx, margin=0.5):
    # pure-JAX reference mirroring the PyTorch forward
    pos = positive_idx.reshape(-1)
    sim = similarity.astype(jnp.float32)
    n = sim.shape[0]
    logp = jax.nn.log_softmax(sim, axis=1)
    ce = -jnp.mean(logp[jnp.arange(n), pos])
    masked = sim - jnp.eye(n, dtype=sim.dtype) * 1e9
    max_neg = jnp.max(masked, axis=1)
    margin_loss = jnp.maximum(max_neg - jnp.diagonal(sim) + margin, 0.0)
    return ce + jnp.mean(margin_loss)


if __name__ == "__main__":
    key = jax.random.PRNGKey(0)
    k1, k2, k3, k4 = jax.random.split(key, 4)

    # main check: N=192 with TM=128 -> 2-tile grid with a masked 64-row tail
    n = 192
    similarity = jax.random.normal(k1, (n, n), dtype=jnp.float32)
    positive_idx = jax.random.randint(k2, (n, 1), 0, n, dtype=jnp.int32)
    out = jax.block_until_ready(
        contrastive_loss(similarity, positive_idx, margin=0.5, block_rows=128))
    ref = _reference(similarity, positive_idx, margin=0.5)
    assert jnp.allclose(out, ref, atol=1e-4, rtol=1e-4), (out, ref)

    # small check: N=8, auto tile size, 1-D targets path
    n2 = 8
    sim2 = jax.random.normal(k3, (n2, n2), dtype=jnp.float32)
    pos2 = jax.random.randint(k4, (n2,), 0, n2, dtype=jnp.int32)
    out2 = jax.block_until_ready(contrastive_loss(sim2, pos2, margin=0.5))
    ref2 = _reference(sim2, pos2, margin=0.5)
    assert jnp.allclose(out2, ref2, atol=1e-4, rtol=1e-4), (out2, ref2)

    print("KERNEL_OK")
</pallas_src>

<mosaic_0001>
module attributes {stable_mosaic.version = 11 : i64} {
  func.func @_contrastive_loss_tile_kernel(%arg0: i32, %arg1: memref<128x192xf32, #tpu.memory_space<vmem>>, %arg2: memref<128x1xi32, #tpu.memory_space<vmem>>, %arg3: memref<1x8x128xf32, #tpu.memory_space<vmem>>, %arg4: memref<1x8x128xf32, #tpu.memory_space<vmem>>) attributes {dimension_semantics = [#tpu.dimension_semantics<parallel>], iteration_bounds = array<i64: 2>, scalar_prefetch = 0 : i64, scratch_operands = 0 : i64, tpu.core_type = #tpu.core_type<tc>, window_params = [{transform_indices = @transform_0, window_bounds = array<i64: 128, 192>}, {transform_indices = @transform_1, window_bounds = array<i64: 128, 1>}, {transform_indices = @transform_2, window_bounds = array<i64: 1, 8, 128>}, {transform_indices = @transform_3, window_bounds = array<i64: 1, 8, 128>}]} {
    %c0 = arith.constant 0 : index
    %c0_0 = arith.constant 0 : index
    %0 = vector.load %arg1[%c0, %c0_0] : memref<128x192xf32, #tpu.memory_space<vmem>>, vector<128x192xf32>
    %c0_1 = arith.constant 0 : index
    %c0_2 = arith.constant 0 : index
    %1 = vector.load %arg2[%c0_1, %c0_2] : memref<128x1xi32, #tpu.memory_space<vmem>>, vector<128x1xi32>
    %2 = tpu.iota {dimensions = array<i32: 1>} : vector<128x192xi32>
    %3 = tpu.iota {dimensions = array<i32: 0>} : vector<128x1xi32>
    %c128_i32 = arith.constant 128 : i32
    %4 = arith.muli %arg0, %c128_i32 : i32
    %5 = vector.broadcast %4 : i32 to vector<128x1xi32>
    %6 = arith.addi %3, %5 : vector<128x1xi32>
    %7 = vector.broadcast %6 : vector<128x1xi32> to vector<128x192xi32>
    %8 = arith.cmpi eq, %2, %7 : vector<128x192xi32>
    %cst = arith.constant 0xFF800000 : f32
    %9 = vector.broadcast %cst : f32 to vector<128x192xf32>
    %10 = arith.select %8, %0, %9 : vector<128x192xi1>, vector<128x192xf32>
    %cst_3 = arith.constant dense<0xFF800000> : vector<128xf32>
    %11 = vector.multi_reduction <maximumf>, %10, %cst_3 [1] : vector<128x192xf32> to vector<128xf32>
    %12 = vector.shape_cast %11 : vector<128xf32> to vector<128x1xf32>
    %cst_4 = arith.constant 1.000000e+09 : f32
    %13 = vector.broadcast %cst_4 : f32 to vector<128x192xf32>
    %14 = arith.subf %0, %13 : vector<128x192xf32>
    %15 = arith.select %8, %14, %0 : vector<128x192xi1>, vector<128x192xf32>
    %cst_5 = arith.constant dense<0xFF800000> : vector<128xf32>
    %16 = vector.multi_reduction <maximumf>, %15, %cst_5 [1] : vector<128x192xf32> to vector<128xf32>
    %17 = vector.shape_cast %16 : vector<128xf32> to vector<128x1xf32>
    %18 = arith.maximumf %17, %12 : vector<128x1xf32>
    %19 = vector.broadcast %18 : vector<128x1xf32> to vector<128x192xf32>
    %20 = arith.subf %0, %19 : vector<128x192xf32>
    %21 = math.exp %20 : vector<128x192xf32>
    %cst_6 = arith.constant dense<0.000000e+00> : vector<128xf32>
    %22 = vector.multi_reduction <add>, %21, %cst_6 [1] : vector<128x192xf32> to vector<128xf32>
    %23 = vector.shape_cast %22 : vector<128xf32> to vector<128x1xf32>
    %24 = math.log %23 : vector<128x1xf32>
    %25 = vector.broadcast %1 : vector<128x1xi32> to vector<128x192xi32>
    %26 = arith.cmpi eq, %2, %25 : vector<128x192xi32>
    %cst_7 = arith.constant 0.000000e+00 : f32
    %27 = vector.broadcast %cst_7 : f32 to vector<128x192xf32>
    %28 = arith.select %26, %20, %27 : vector<128x192xi1>, vector<128x192xf32>
    %cst_8 = arith.constant dense<0.000000e+00> : vector<128xf32>
    %29 = vector.multi_reduction <add>, %28, %cst_8 [1] : vector<128x192xf32> to vector<128xf32>
    %30 = vector.shape_cast %29 : vector<128xf32> to vector<128x1xf32>
    %31 = arith.subf %24, %30 : vector<128x1xf32>
    %32 = arith.subf %17, %12 : vector<128x1xf32>
    %cst_9 = arith.constant 5.000000e-01 : f32
    %33 = vector.broadcast %cst_9 : f32 to vector<128x1xf32>
    %34 = arith.addf %32, %33 : vector<128x1xf32>
    %cst_10 = arith.constant 0.000000e+00 : f32
    %35 = vector.broadcast %cst_10 : f32 to vector<128x1xf32>
    %36 = arith.maximumf %34, %35 : vector<128x1xf32>
    %c192_i32 = arith.constant 192 : i32
    %37 = vector.broadcast %c192_i32 : i32 to vector<128x1xi32>
    %38 = arith.cmpi slt, %6, %37 : vector<128x1xi32>
    %cst_11 = arith.constant 0.000000e+00 : f32
    %39 = vector.broadcast %cst_11 : f32 to vector<128x1xf32>
    %40 = arith.select %38, %31, %39 : vector<128x1xi1>, vector<128x1xf32>
    %cst_12 = arith.constant 0.000000e+00 : f32
    %41 = vector.broadcast %cst_12 : f32 to vector<128x1xf32>
    %42 = arith.select %38, %36, %41 : vector<128x1xi1>, vector<128x1xf32>
    %43 = vector.shape_cast %40 : vector<128x1xf32> to vector<1x128x1xf32>
    %cst_13 = arith.constant dense<0.000000e+00> : vector<1xf32>
    %44 = vector.multi_reduction <add>, %43, %cst_13 [1, 2] : vector<1x128x1xf32> to vector<1xf32>
    %45 = vector.shape_cast %44 : vector<1xf32> to vector<1x1x1xf32>
    %46 = vector.extract %45[0, 0, 0] : f32 from vector<1x1x1xf32>
    %47 = vector.broadcast %46 : f32 to vector<1x8x128xf32>
    %c0_14 = arith.constant 0 : index
    %c0_15 = arith.constant 0 : index
    %c0_16 = arith.constant 0 : index
    %48 = vector.load %arg3[%c0_14, %c0_15, %c0_16] : memref<1x8x128xf32, #tpu.memory_space<vmem>>, vector<1x8x128xf32>
    tpu.vector_store %arg3[%c0_14, %c0_15, %c0_16], %47 {strides = array<i32>} : memref<1x8x128xf32, #tpu.memory_space<vmem>>, vector<1x8x128xf32>,
    %49 = vector.shape_cast %42 : vector<128x1xf32> to vector<1x128x1xf32>
    %cst_17 = arith.constant dense<0.000000e+00> : vector<1xf32>
    %50 = vector.multi_reduction <add>, %49, %cst_17 [1, 2] : vector<1x128x1xf32> to vector<1xf32>
    %51 = vector.shape_cast %50 : vector<1xf32> to vector<1x1x1xf32>
    %52 = vector.extract %51[0, 0, 0] : f32 from vector<1x1x1xf32>
    %53 = vector.broadcast %52 : f32 to vector<1x8x128xf32>
    %c0_18 = arith.constant 0 : index
    %c0_19 = arith.constant 0 : index
    %c0_20 = arith.constant 0 : index
    %54 = vector.load %arg4[%c0_18, %c0_19, %c0_20] : memref<1x8x128xf32, #tpu.memory_space<vmem>>, vector<1x8x128xf32>
    tpu.vector_store %arg4[%c0_18, %c0_19, %c0_20], %53 {strides = array<i32>} : memref<1x8x128xf32, #tpu.memory_space<vmem>>, vector<1x8x128xf32>,
    return
  }
  func.func @transform_0(%arg0: i32) -> (i32, i32) {
    %c0_i32 = arith.constant 0 : i32
    %c0_i32_0 = arith.constant 0 : i32
    return %arg0, %c0_i32 : i32, i32
  }
  func.func @transform_1(%arg0: i32) -> (i32, i32) {
    %c0_i32 = arith.constant 0 : i32
    %c0_i32_0 = arith.constant 0 : i32
    return %arg0, %c0_i32 : i32, i32
  }
  func.func @transform_2(%arg0: i32) -> (i32, i32, i32) {
    %c0_i32 = arith.constant 0 : i32
    %c0_i32_0 = arith.constant 0 : i32
    %c0_i32_1 = arith.constant 0 : i32
    return %arg0, %c0_i32, %c0_i32_0 : i32, i32, i32
  }
  func.func @transform_3(%arg0: i32) -> (i32, i32, i32) {
    %c0_i32 = arith.constant 0 : i32
    %c0_i32_0 = arith.constant 0 : i32
    %c0_i32_1 = arith.constant 0 : i32
    return %arg0, %c0_i32, %c0_i32_0 : i32, i32, i32
  }
}

</mosaic_0001>

<bundles_post_ra>
// kernel: tpu_custom_call.1
= control target key start
LH: loop header
LB: loop body
LE: loop exit
PB: predicated region body
PF: predicated region fallthrough
CT: control target
= control target key end

     0   :  { %9 = vsyncpa [#allocation3], 0  ;;  %s2911_s0 = inlined_call_operand.hbm [shape: f32[192,192], index: 0, kind: input, shape index: {}]   ;;  %s2912_s1 = inlined_call_operand.vmem [shape: s32[192,1], index: 1, kind: input, shape index: {}]   ;;  %s2913_s2 = inlined_call_operand.hbm [shape: f32[2,8,128], index: 2, kind: output, shape index: {0}]   ;;  %s2914_s3 = inlined_call_operand.hbm [shape: f32[2,8,128], index: 3, kind: output, shape index: {1}]  }
   0x1   :  { %11 = vsyncpa [#allocation3 + $0x1], 0 }
   0x2   :  { %12 = vsyncpa [#allocation4], 0 }
   0x3   :  { %14 = vsyncpa [#allocation4 + $0x1], 0 }
   0x4   :  { %15 = vsyncpa [#allocation7], 0 }
   0x5   :  { %17 = vsyncpa [#allocation7 + $0x1], 0  ;;  %s1714_s12 = smov 0   ;;  %s1716_s13 = smov 0  }
   0x6   :  { %s1718_s14 = smov 0   ;;  %s1720_s15 = smov 0  }
   0x7 LB: > { %s1735_s16 = sadd.s32 4294967295, %s1688_s15   ;;  %s1333_s17 = sadd.s32 4294967294, %s1688_s15   ;;  %s1688_s15 = sphi %s1720_s15, %s3031_s15   ;;  %s1684_s14 = sphi %s1718_s14, %s3030_s14   ;;  %s1680_s13 = sphi %s1716_s13, %s3029_s13   ;;  %s1676_s12 = sphi %s1714_s12, %s3028_s12  }
   0x8   : > { %s1739_s18 = sadd.s32 1, %s1688_s15   ;;  %s30_s19 = sadd.s32 1, %s1684_s14 }
   0x9   : > { %s27_s20 = ssub.s32 %s1688_s15, %s1739_s18  ;;  %p37_p0 = scmp.ne.s32.totalorder %s1684_s14, %s1680_s13 }
   0xa   : > { %p28_p1 = scmp.eq.s32.totalorder %s27_s20, 0  ;;  %p38_p2 = scmp.eq.s32.totalorder %s1688_s15, 0 }
   0xb   : > { %p43_p3 = scmp.ne.s32.totalorder %s1680_s13, %s1676_s12  ;;  %p44_p4 = scmp.eq.s32.totalorder %s1735_s16, 0 }
   0xc   : > { %s1751_s21 = scalar_select %p28_p1, %s1684_s14, %s30_s19  }
   0xd   : > { %p39_p5 = por %p38_p2, %p37_p0  ;;  %p1753_p6 = por %p44_p4, %p43_p3 }
   0xe   : > { %p93_p7 = scmp.eq.s32.totalorder %s1735_s16, 1  ;;  %p99_p8 = scmp.eq.s32.totalorder %s1333_s17, 1 }
   0xf   : > { %p2915_p11 = scmp.ge.s32.totalorder %s1688_s15, 2 }
  0x10   : > { %p1758_p9 = por %p93_p7, %p37_p0  ;;  %p1762_p10 = por %p99_p8, %p43_p3 }
  0x11   : > { %141 = sbr.rel (%p2915_p11) target bundleno = 58 (0x3a), region = 16 }
  0x16   : > { %144 = sbr.rel (!%p39_p5) target bundleno = 58 (0x3a), region = 20  ;;  %s145_s25 = sand.u32 (%p39_p5), 1, %s1684_s14  }
  0x17   : > { %s1337_s26 = sshll.u32 (%p39_p5), %s1688_s15, 4  ;;  %s1336_s27 = sshll.u32 (%p39_p5), %s145_s25, 8 }
  0x18   : > { %s151_s28 = ssub.s32 (%p39_p5), 24, %s1337_s26  ;;  %s1774_s5 = scalar_lea.sflag (%p39_p5), [#allocation3], %s145_s25 }
  0x19   : > { %p152_p12 = scmp.lt.s32.totalorder (%p39_p5), %s151_s28, 16  ;;  %s149_s6 = scalar_lea.vmem (%p39_p5), [#allocation2], %s1336_s27 }
  0x1b   : > { %s3033_s28 = smov (!%p152_p12, %s151_s28), 16 }
  0x1c   : > { %s1390_s29 = sshll.u32 %s3033_s28, 4 }
  0x1d   : > { %s156_s30 = ssub.s32 256, %s1390_s29 }
  0x1e   : > { %s157_s4 = sshll.u32 %s156_s30, 4 }
  0x1f   : > { %158 = vsyncadd %s1774_s5, %s157_s4  ;;  %p1777_p13 = scmp.ne.s32.totalorder %s1390_s29, 0  ;;  %s1392_s8 = sshll.u32 %s1688_s15, 8 }
  0x20   : > { %s162_s11 = scalar_lea.hbm %s2911_s0, %s1392_s8  ;;  %s1785_s17 = sshll.u32 %s149_s6, 4  ;;  %s167_s17 = int_to_ptr.vmem [resolvable:$true] %s1785_s17 }
  0x21   : > { %s164_s19 = sshll.u32 %s162_s11, 4  ;;  %s1344_s20 = sshll.u32 %s3033_s28, 8  ;;  %s1788_s19 = int_to_ptr.hbm [resolvable:$true] %s164_s19 }
  0x22   : > { %s1551_s25 = sshra.s32 %s1788_s19, 4  ;;  %s1553_s26 = sshrl.u32 %s1344_s20, 4  ;;  %s1552_s25 = int_to_ptr.hbm [resolvable:$true] %s1551_s25 }
  0x23   : > { %s1558_s27 = scalar_lea.hbm %s1552_s25, %s1553_s26  ;;  %s1562_s4 = scalar_lea.hbm %s2911_s0, 384 }
  0x24   : > { %p1559_p0 = scmp.ne.s32.totalorder %s1552_s25, %s1558_s27  ;;  %p1563_p3 = scmp.lt.s32.totalorder %s1552_s25, %s2911_s0 }
  0x25   : > { %p1564_p4 = scmp.lt.s32.totalorder %s1562_s4, %s1558_s27 }
  0x26   : > { %p1560_p1 = pnand %p1559_p0, %p1777_p13 }
  0x27   : > { %p1565_p5 = por %p1564_p4, %p1563_p3 }
  0x28   : > { %p1561_p2 = pneg %p1560_p1 }
  0x2a   : > { %p1566_p7 = pnand %p1565_p5, %p1561_p2 }
  0x2c   : > { %1569 = shalt.err (!%p1566_p7)
}
  0x2d   : > { %s1570_s9 = sshra.s32 %s167_s17, 4  ;;  %s1690_s11 = smov [#allocation2]   ;;  %s1571_s9 = int_to_ptr.vmem [resolvable:$true] %s1570_s9 }
  0x2e   : > { %s1577_s10 = scalar_lea.vmem %s1571_s9, %s1553_s26  ;;  %s1581_s29 = scalar_lea.vmem %s1690_s11, 512 }
  0x2f   : > { %p1578_p8 = scmp.ne.s32.totalorder %s1571_s9, %s1577_s10  ;;  %p1583_p1 = scmp.lt.s32.totalorder %s1581_s29, %s1577_s10 }
  0x31   : > { %p1579_p12 = pnand %p1578_p8, %p1777_p13 }
  0x33   : > { %p1580_p0 = pneg %p1579_p12 }
  0x35   : > { %p1585_p11 = pnand %p1583_p1, %p1580_p0 }
  0x37   : > { %1588 = shalt.err (!%p1585_p11)
}
  0x38   : > { %s1691_s25 = smov 256   ;;  %s1692_s27 = smov 16  }
  0x39   : > { %172 = dma.hbm_to_vmem [thread:$0]  (%p1777_p13), %s1788_s19, %s1344_s20, %s167_s17, %s1774_s5, %s1691_s25, %s1691_s25, %s1692_s27  }
  0x3a PF: > { %p1345_p2 = scmp.ge.s32.totalorder %s1688_s15, 1  ;;  %p191_p3 = scmp.lt.s32.totalorder %s1688_s15, 3 }
  0x3c   : > { %p192_p4 = pnand %p1345_p2, %p191_p3 }
  0x3e   : > { %195 = sbr.rel (%p192_p4) target bundleno = 689 (0x2b1), region = 28 }
  0x43   : > { %s1817_s26 = sand.u32 1, %s1680_s13  }
  0x44   : > { %s1346_s30 = sshll.u32 %s1817_s26, 8  ;;  %s198_s4 = scalar_lea.sflag [#allocation3], %s1817_s26 }
  0x45   : > { %s1821_s7 = scalar_lea.vmem [#allocation2], %s1346_s30 }
  0x46   : > { %1663 = dma.done.wait (%p1753_p6), %s198_s4, 4096  }
  0x47   : > { %1665 = vsyncadd (%p1753_p6), %s198_s4, 4294963200  ;;  %v307_v0 = vlaneseq  ;;  %s1351_s28 = sshll.u32 %s1735_s16, 7  ;;  %vm409_vm0 = vcmask 523264   ;;  %v1858_v14 = vld [vmem:[%s1821_s7] sm:$0xff]  ;;  %v1861_v15 = vld [vmem:[%s1821_s7 + $0x8] sm:$0xff]  ;;  %s1349_s22 = sshll.u32 %s1735_s16, 4 }
  0x48   : > { %v1828_v1 = vstv %s1351_s28  ;;  %2970 = vst [vmem:[#allocation14_spill] sm:$0xff] %v1861_v15  ;;  %v1864_v16 = vld [vmem:[%s1821_s7 + $0x40] sm:$0xff]  ;;  %v1887_v23 = vld [vmem:[%s1821_s7 + $0x48] sm:$0xff]  ;;  %v1911_v29 = vld [vmem:[%s1821_s7 + $0x10] sm:$0xff]  ;;  %p250_p6 = scmp.lt.s32.totalorder %s1349_s22, 23  ;;  %s1347_s6 = sshll.u32 %s1817_s26, 3 }
  0x49   : > { %v1830_v2 = vand.u32 127, %v307_v0  ;;  %v1832_v3 = vshrl.u32 %v307_v0, 7  ;;  %v1894_v24 = vld [vmem:[%s1821_s7 + $0x20] sm:$0xff]  ;;  %v1897_v25 = vld [vmem:[%s1821_s7 + $0x28] sm:$0xff]  ;;  %v1914_v30 = vld [vmem:[%s1821_s7 + $0x18] sm:$0xff]  ;;  %s1386_s8 = sshll.u32 %s1735_s16, 3 }
  0x4a   : > { %2973 = vst [vmem:[#allocation17_spill] sm:$0xff] %v1914_v30  ;;  %v1932_v36 = vld [vmem:[%s1821_s7 + $0x50] sm:$0xff]  ;;  %v1935_v37 = vld [vmem:[%s1821_s7 + $0x58] sm:$0xff]  ;;  %v1970_v47 = vld [vmem:[%s1821_s7 + $0x68] sm:$0xff]  ;;  %s3035_s22 = smov (!%p250_p6, %s1349_s22), 23  ;;  %s1199_s11 = scalar_lea.hbm %s2913_s2, %s1386_s8 }
  0x4b   : > { %2967 = vst [vmem:[#allocation11_spill] sm:$0xff] %v1830_v2  ;;  %v1835_v4 = vadd.s32 128, %v1830_v2  ;;  %v1839_v5 = vadd.s32 %v1828_v1, %v1832_v3  ;;  %v315_v6 = vadd.s32 32, %v1832_v3  ;;  %v313_v7 = vadd.s32 16, %v1832_v3  ;;  %v1949_v41 = vld [vmem:[%s1821_s7 + $0x38] sm:$0xff]  ;;  %v1955_v44 = vld [vmem:[%s1821_s7 + $0x30] sm:$0xff]  ;;  %s1213_s4 = scalar_lea.hbm %s2914_s3, %s1386_s8 }
  0x4c   : > { %v312_v8 = vadd.s32 8, %v1832_v3  ;;  %v316_v9 = vadd.s32 40, %v1832_v3  ;;  %v314_v10 = vadd.s32 24, %v1832_v3  ;;  %v317_v11 = vadd.s32 48, %v1832_v3  ;;  %v1987_v54 = vld [vmem:[%s1821_s7 + $0x60] sm:$0xff]  ;;  %v2002_v63 = vld [vmem:[%s1821_s7 + $0x88] sm:$0xff] }
  0x4d   : > { %2968 = vst [vmem:[#allocation12_spill] sm:$0xff] %v1835_v4  ;;  %vm345_vm1 = vcmp.eq.s32.totalorder %v1830_v2, %v1839_v5  ;;  %vm346_vm2 = vcmp.eq.s32.totalorder %v1835_v4, %v1839_v5  ;;  %v1852_v12 = vadd.s32 %v1828_v1, %v315_v6  ;;  %v1855_v13 = vadd.s32 %v1828_v1, %v313_v7  ;;  %v1999_v62 = vld [vmem:[%s1821_s7 + $0x80] sm:$0xff]  ;;  %v2008_v6 = vld [vmem:[%s1821_s7 + $0x78] sm:$0xff]  ;;  %s1350_s5 = sshll.u32 %s3035_s22, 3  ;;  %s238_s29 = scalar_lea.vmem [#allocation6], %s1347_s6 }
  0x4e   : > { %2969 = vst [vmem:[#allocation13_spill] sm:$0xff] %v1839_v5  ;;  %v1867_v17 = vadd.s32 %v1828_v1, %v312_v8  ;;  %v1870_v18 = vadd.s32 %v1828_v1, %v316_v9  ;;  %v1873_v19 = vadd.s32 %v1828_v1, %v314_v10  ;;  %v1876_v20 = vadd.s32 %v1828_v1, %v317_v11  ;;  %s2385_s20 = scalar_lea.vmem %s2912_s1, %s1350_s5  ;;  %s1215_s25 = sshll.u32 %s238_s29, 4  ;;  %s2864_s25 = int_to_ptr.vmem [resolvable:$true] %s1215_s25 }
  0x4f   : > { %v377_v21 = vsel %vm345_vm1, %v1858_v14, -inf  ;;  %v378_v22 = vsel %vm346_vm2, %v1861_v15, -inf  ;;  %vm353_vm3 = vcmp.eq.s32.totalorder %v1830_v2, %v1852_v12  ;;  %vm354_vm4 = vcmp.eq.s32.totalorder %v1835_v4, %v1852_v12  ;;  %2974 = vst [vmem:[#allocation18_spill] sm:$0xff] %v2002_v63  ;;  %s1203_s22 = sshll.u32 %s1199_s11, 4  ;;  %s1217_s5 = sshll.u32 %s1213_s4, 4  ;;  %s1204_s22 = int_to_ptr.hbm [resolvable:$true] %s1203_s22  ;;  %s2866_s5 = int_to_ptr.hbm [resolvable:$true] %s1217_s5 }
  0x50   : > { %2971 = vst [vmem:[#allocation15_spill] sm:$0xff] %v1867_v17  ;;  %v410_v26 = vsel %vm409_vm0, %v378_v22, -inf  ;;  %v385_v27 = vsel %vm353_vm3, %v1864_v16, -inf  ;;  %v386_v28 = vsel %vm354_vm4, %v1887_v23, -inf  ;;  %vm349_vm5 = vcmp.eq.s32.totalorder %v1830_v2, %v1855_v13  ;;  %s1184_s19 = scalar_lea.sflag [#allocation4], %s1817_s26  ;;  %s1610_s10 = scalar_lea.hbm %s2913_s2, 16 }
  0x51   : > { %2972 = vst [vmem:[#allocation16_spill] sm:$0xff] %v1870_v18  ;;  %v411_v31 = vmax.f32 %v377_v21, %v410_v26  ;;  %v426_v32 = vsel %vm409_vm0, %v386_v28, -inf  ;;  %vm350_vm6 = vcmp.eq.s32.totalorder %v1835_v4, %v1855_v13  ;;  %v381_v33 = vsel %vm349_vm5, %v1894_v24, -inf  ;;  %v2029_v21 = vld [vmem:[%s1821_s7 + $0x70] sm:$0xff] }
  0x52   : > { %v427_v34 = vmax.f32 %v385_v27, %v426_v32  ;;  %v382_v35 = vsel %vm350_vm6, %v1897_v25, -inf  ;;  %vm347_vm7 = vcmp.eq.s32.totalorder %v1830_v2, %v1867_v17  ;;  %vm348_vm8 = vcmp.eq.s32.totalorder %v1835_v4, %v1867_v17  ;;  %v2052_v32 = vld [vmem:[%s1821_s7 + $0x98] sm:$0xff] }
  0x53   : > { %412 = vmax.xlane.f32.xlu0 %v411_v31  ;;  %v418_v38 = vsel %vm409_vm0, %v382_v35, -inf  ;;  %v379_v39 = vsel %vm347_vm7, %v1911_v29, -inf  ;;  %v380_v40 = vsel %vm348_vm8, %v1914_v30, -inf  ;;  %vm2918_vm9 = vcmp.eq.s32.totalorder %v1830_v2, %v1870_v18 }
  0x54   : > { %428 = vmax.xlane.f32.xlu2 %v427_v34  ;;  %v419_v42 = vmax.f32 %v381_v33, %v418_v38  ;;  %v414_v43 = vsel %vm409_vm0, %v380_v40, -inf  ;;  %vm2923_vm10 = vcmp.eq.s32.totalorder %v1835_v4, %v1870_v18  ;;  %v387_v45 = vsel %vm2918_vm9, %v1932_v36, -inf }
  0x55   : > { %v388_v46 = vsel %vm2923_vm10, %v1935_v37, -inf  ;;  %vm351_vm11 = vcmp.eq.s32.totalorder %v1830_v2, %v1873_v19  ;;  %vm352_vm12 = vcmp.eq.s32.totalorder %v1835_v4, %v1873_v19  ;;  %v415_v48 = vmax.f32 %v379_v39, %v414_v43  ;;  %v2063_v39 = vld [vmem:[%s1821_s7 + $0xb8] sm:$0xff]  ;;  %v2069_v43 = vld [vmem:[%s1821_s7 + $0x90] sm:$0xff] }
  0x56   : > { %420 = vmax.xlane.f32.xlu1 %v419_v42  ;;  %v430_v49 = vsel %vm409_vm0, %v388_v46, -inf  ;;  %v384_v50 = vsel %vm352_vm12, %v1949_v41, -inf  ;;  %v383_v51 = vsel %vm351_vm11, %v1955_v44, -inf  ;;  %vm2917_vm13 = vcmp.eq.s32.totalorder %v1830_v2, %v1876_v20  ;;  %v2078_v46 = vld [vmem:[%s1821_s7 + $0xa8] sm:$0xff] }
  0x57   : > { %v422_v52 = vsel %vm409_vm0, %v384_v50, -inf  ;;  %vm2916_vm14 = vcmp.eq.s32.totalorder %v1835_v4, %v1876_v20  ;;  %v431_v53 = vmax.f32 %v387_v45, %v430_v49  ;;  %v319_v56 = vadd.s32 64, %v1832_v3  ;;  %2976 = vst [vmem:[#allocation20_spill] sm:$0xff] %v2078_v46  ;;  %v2083_v49 = vld [vmem:[%s1821_s7 + $0xb0] sm:$0xff] }
  0x58   : > { %v390_v55 = vsel %vm2916_vm14, %v1970_v47, -inf  ;;  %v318_v57 = vadd.s32 56, %v1832_v3  ;;  %v320_v58 = vadd.s32 72, %v1832_v3  ;;  %v322_v59 = vadd.s32 88, %v1832_v3 }
  0x59   : > { %v321_v60 = vadd.s32 80, %v1832_v3  ;;  %v423_v61 = vmax.f32 %v383_v51, %v422_v52  ;;  %v2005_v0 = vadd.s32 %v1828_v1, %v319_v56  ;;  %v389_v8 = vsel %vm2917_vm13, %v1987_v54, -inf }
  0x5a   : > { %v2011_v7 = vadd.s32 %v1828_v1, %v318_v57  ;;  %v434_v9 = vsel %vm409_vm0, %v390_v55, -inf  ;;  %v2019_v10 = vadd.s32 %v1828_v1, %v320_v58  ;;  %v2022_v11 = vadd.s32 %v1828_v1, %v322_v59  ;;  %v2104_v57 = vld [vmem:[%s1821_s7 + $0xa0] sm:$0xff] }
  0x5b   : > { %2975 = vst [vmem:[#allocation19_spill] sm:$0xff] %v2005_v0  ;;  %416 = vmax.xlane.f32.xlu0 %v415_v48  ;;  %vm2919_vm15 = vcmp.eq.s32.totalorder %v1830_v2, %v2005_v0  ;;  %vm2920_vm14 = vcmp.eq.s32.totalorder %v1835_v4, %v2005_v0  ;;  %v2048_v28 = vadd.s32 %v1828_v1, %v321_v60  ;;  %v323_v33 = vadd.s32 96, %v1832_v3 }
  0x5c   : > { %432 = vmax.xlane.f32.xlu2 %v431_v53  ;;  %vm2922_vm13 = vcmp.eq.s32.totalorder %v1830_v2, %v2011_v7  ;;  %vm2921_vm9 = vcmp.eq.s32.totalorder %v1835_v4, %v2011_v7  ;;  %v393_v22 = vsel %vm2919_vm15, %v1999_v62, -inf  ;;  %v394_v26 = vsel %vm2920_vm14, %v2002_v63, -inf  ;;  %2978 = vst [vmem:[#allocation22_spill] sm:$0xff] %v2104_v57 }
  0x5d   : > { %v392_v27 = vsel %vm2921_vm9, %v2008_v6, -inf  ;;  %v442_v31 = vsel %vm409_vm0, %v394_v26, -inf  ;;  %vm2927_vm15 = vcmp.eq.s32.totalorder %v1835_v4, %v2019_v10  ;;  %v435_v34 = vmax.f32 %v389_v8, %v434_v9 }
  0x5e   : > { %424 = vmax.xlane.f32.xlu1 %v423_v61  ;;  %v391_v35 = vsel %vm2922_vm13, %v2029_v21, -inf  ;;  %v438_v38 = vsel %vm409_vm0, %v392_v27, -inf  ;;  %v325_v40 = vadd.s32 112, %v1832_v3  ;;  %v443_v42 = vmax.f32 %v393_v22, %v442_v31  ;;  %v2118_v61 = vld [vmem:[%s1821_s7 + $0xc8] sm:$0xff] }
  0x5f   : > { %vm2924_vm14 = vcmp.eq.s32.totalorder %v1835_v4, %v2022_v11  ;;  %vm2925_vm9 = vcmp.eq.s32.totalorder %v1830_v2, %v2019_v10  ;;  %v396_v45 = vsel %vm2927_vm15, %v2052_v32, -inf  ;;  %vm2929_vm13 = vcmp.eq.s32.totalorder %v1835_v4, %v2048_v28  ;;  %2979 = vst [vmem:[#allocation23_spill] sm:$0xff] %v2118_v61  ;;  %v2132_v31 = vld [vmem:[%s1821_s7 + $0xe8] sm:$0xff] }
  0x60   : > { %v439_v48 = vmax.f32 %v391_v35, %v438_v38  ;;  %vm2926_vm10 = vcmp.eq.s32.totalorder %v1830_v2, %v2022_v11  ;;  %v400_v50 = vsel %vm2924_vm14, %v2063_v39, -inf  ;;  %v2092_v51 = vadd.s32 %v1828_v1, %v323_v33  ;;  %v2146_v35 = vld [vmem:[%s1821_s7 + $0xd8] sm:$0xff] }
  0x61   : > { %v2095_v52 = vadd.s32 %v1828_v1, %v325_v40  ;;  %v324_v53 = vadd.s32 104, %v1832_v3  ;;  %v395_v55 = vsel %vm2925_vm9, %v2069_v43, -inf  ;;  %v446_v56 = vsel %vm409_vm0, %v396_v45, -inf  ;;  %2982 = vst [vmem:[#allocation26_spill] sm:$0xff] %v2146_v35  ;;  %v2151_v40 = vld [vmem:[%s1821_s7 + $0xe0] sm:$0xff] }
  0x62   : > { %vm2928_vm14 = vcmp.eq.s32.totalorder %v1830_v2, %v2048_v28  ;;  %v398_v58 = vsel %vm2929_vm13, %v2078_v46, -inf  ;;  %v399_v59 = vsel %vm2926_vm10, %v2083_v49, -inf  ;;  %v454_v60 = vsel %vm409_vm0, %v400_v50, -inf }
  0x63   : > { %436 = vmax.xlane.f32.xlu0 %v435_v34  ;;  %2977 = vst [vmem:[#allocation21_spill] sm:$0xff] %v2095_v52  ;;  %vm2930_vm9 = vcmp.eq.s32.totalorder %v1835_v4, %v2092_v51  ;;  %v2123_v8 = vadd.s32 %v1828_v1, %v324_v53  ;;  %v326_v9 = vadd.s32 120, %v1832_v3  ;;  %v447_v22 = vmax.f32 %v395_v55, %v446_v56  ;;  %v2137_v34 = vld [vmem:[%s1821_s7 + $0xc0] sm:$0xff]  ;;  %v2168_v53 = vld [vmem:[%s1821_s7 + $0xd0] sm:$0xff] }
  0x64   : > { %444 = vmax.xlane.f32.xlu2 %v443_v42  ;;  %v397_v26 = vsel %vm2928_vm14, %v2104_v57, -inf  ;;  %v450_v27 = vsel %vm409_vm0, %v398_v58, -inf  ;;  %vm2931_vm10 = vcmp.eq.s32.totalorder %v1835_v4, %v2095_v52  ;;  %v455_v33 = vmax.f32 %v399_v59, %v454_v60  ;;  %2981 = vst [vmem:[#allocation25_spill] sm:$0xff] %v2137_v34  ;;  %v2182_v58 = vld [vmem:[%s1821_s7 + $0xf8] sm:$0xff] }
  0x65   : > { %2980 = vst [vmem:[#allocation24_spill] sm:$0xff] %v2123_v8  ;;  %vm369_vm15 = vcmp.eq.s32.totalorder %v1830_v2, %v2092_v51  ;;  %v402_v3 = vsel %vm2930_vm9, %v2118_v61, -inf  ;;  %vm372_vm14 = vcmp.eq.s32.totalorder %v1835_v4, %v2123_v8  ;;  %v451_v38 = vmax.f32 %v397_v26, %v450_v27 }
  0x66   : > { %440 = vmax.xlane.f32.xlu1 %v439_v48  ;;  %vm2932_vm13 = vcmp.eq.s32.totalorder %v1830_v2, %v2095_v52  ;;  %v406_v42 = vsel %vm2931_vm10, %v2132_v31, -inf  ;;  %v2160_v45 = vadd.s32 %v1828_v1, %v326_v9  ;;  %v401_v48 = vsel %vm369_vm15, %v2137_v34, -inf  ;;  %2984 = vst [vmem:[#allocation28_spill] sm:$0xff] %v2168_v53 }
  0x67   : > { %v458_v50 = vsel %vm409_vm0, %v402_v3, -inf  ;;  %vm371_vm9 = vcmp.eq.s32.totalorder %v1830_v2, %v2123_v8  ;;  %v404_v1 = vsel %vm372_vm14, %v2146_v35, -inf  ;;  %v405_v55 = vsel %vm2932_vm13, %v2151_v40, -inf }
  0x68   : > { %2983 = vst [vmem:[#allocation27_spill] sm:$0xff] %v2160_v45  ;;  %v466_v56 = vsel %vm409_vm0, %v406_v42, -inf  ;;  %vm376_vm10 = vcmp.eq.s32.totalorder %v1835_v4, %v2160_v45  ;;  %v1355_v59 = vadd.f32 -1e+09, %v1914_v30  ;;  %v459_v60 = vmax.f32 %v401_v48, %v458_v50 }
  0x69   : > { %v403_v9 = vsel %vm371_vm9, %v2168_v53, -inf  ;;  %v467_v26 = vmax.f32 %v405_v55, %v466_v56  ;;  %v1353_v27 = vadd.f32 -1e+09, %v1861_v15  ;;  %vm375_vm13 = vcmp.eq.s32.totalorder %v1830_v2, %v2160_v45 }
  0x6a   : > { %v408_v3 = vsel %vm376_vm10, %v2182_v58, -inf  ;;  %v509_v48 = vsel %vm348_vm8, %v1355_v59, %v1914_v30  ;;  %v1352_v50 = vadd.f32 -1e+09, %v1858_v14  ;;  %vm2992_vm8 = vcmp.eq.s32.totalorder %v1835_v4, %v2048_v28 }
  0x6b   : > { %448 = vmax.xlane.f32.xlu0 %v447_v22  ;;  %v462_v22 = vsel %vm409_vm0, %v404_v1, -inf  ;;  %v470_v55 = vsel %vm409_vm0, %v408_v3, -inf  ;;  %v507_v56 = vsel %vm346_vm2, %v1353_v27, %v1861_v15  ;;  %v1356_v15 = vadd.f32 -1e+09, %v1894_v24 }
  0x6c   : > { %456 = vmax.xlane.f32.xlu2 %v455_v33  ;;  %v2194_v33 = vld [vmem:[%s1821_s7 + $0xf0] sm:$0xff]  ;;  %v463_v42 = vmax.f32 %v403_v9, %v462_v22  ;;  %v1357_v9 = vadd.f32 -1e+09, %v1897_v25  ;;  %v1361_v22 = vadd.f32 -1e+09, %v1887_v23  ;;  %v506_v3 = vsel %vm345_vm1, %v1352_v50, %v1858_v14 }
  0x6d   : > { %v407_v1 = vsel %vm375_vm13, %v2194_v33, -inf  ;;  %v538_v27 = vsel %vm409_vm0, %v507_v56, -inf  ;;  %v510_v56 = vsel %vm349_vm5, %v1356_v15, %v1894_v24  ;;  %vm2985_vm1 = vcmp.eq.s32.totalorder %v1835_v4, %v1870_v18 }
  0x6e   : > { %452 = vmax.xlane.f32.xlu1 %v451_v38  ;;  %v1354_v38 = vadd.f32 -1e+09, %v1911_v29  ;;  %v515_v50 = vsel %vm354_vm4, %v1361_v22, %v1887_v23  ;;  %vm2986_vm2 = vcmp.eq.s32.totalorder %v1835_v4, %v2011_v7  ;;  %vm2988_vm4 = vcmp.eq.s32.totalorder %v1835_v4, %v1876_v20 }
  0x6f   : > { %v554_v22 = vsel %vm409_vm0, %v515_v50, -inf  ;;  %v1366_v50 = vadd.f32 -1e+09, %v2029_v21  ;;  %vm2989_vm5 = vcmp.eq.s32.totalorder %v1830_v2, %v2011_v7 }
  0x70   : > { %v508_v59 = vsel %vm347_vm7, %v1354_v38, %v1911_v29  ;;  %v1359_v38 = vadd.f32 -1e+09, %v1949_v41  ;;  %vm2991_vm7 = vcmp.eq.s32.totalorder %v1835_v4, %v2005_v0 }
  0x73   : > { %460 = vmax.xlane.f32.xlu0 %v459_v60  ;;  %v542_v60 = vsel %vm409_vm0, %v509_v48, -inf  ;;  %v1360_v48 = vadd.f32 -1e+09, %v1864_v16 }
  0x74   : > { %468 = vmax.xlane.f32.xlu2 %v467_v26  ;;  %v471_v26 = vmax.f32 %v407_v1, %v470_v55  ;;  %v543_v30 = vmax.f32 %v508_v59, %v542_v60  ;;  %v539_v1 = vmax.f32 %v506_v3, %v538_v27  ;;  %v1358_v55 = vadd.f32 -1e+09, %v1955_v44 }
  0x75   : > { %v513_v60 = vsel %vm352_vm12, %v1359_v38, %v1949_v41  ;;  %vm2994_vm12 = vcmp.eq.s32.totalorder %v1835_v4, %v2019_v10 }
  0x76   : > { %464 = vmax.xlane.f32.xlu1 %v463_v42  ;;  %v511_v42 = vsel %vm350_vm6, %v1357_v9, %v1897_v25  ;;  %v514_v9 = vsel %vm353_vm3, %v1360_v48, %v1864_v16  ;;  %v512_v3 = vsel %vm351_vm11, %v1358_v55, %v1955_v44  ;;  %v550_v27 = vsel %vm409_vm0, %v513_v60, -inf }
  0x77   : > { %v546_v59 = vsel %vm409_vm0, %v511_v42, -inf  ;;  %v555_v38 = vmax.f32 %v514_v9, %v554_v22  ;;  %v1362_v42 = vadd.f32 -1e+09, %v1932_v36  ;;  %v1365_v48 = vadd.f32 -1e+09, %v1970_v47 }
  0x78   : > { %v547_v15 = vmax.f32 %v510_v56, %v546_v59  ;;  %v551_v56 = vmax.f32 %v512_v3, %v550_v27  ;;  %v1364_v59 = vadd.f32 -1e+09, %v1987_v54  ;;  %vm2987_vm3 = vcmp.eq.s32.totalorder %v1830_v2, %v1870_v18 }
  0x79   : > { %v516_v60 = vsel %vm2987_vm3, %v1362_v42, %v1932_v36  ;;  %v519_v22 = vsel %vm2988_vm4, %v1365_v48, %v1970_v47  ;;  %v1693_v3 = vmov 0   ;;  %v1373_v27 = vadd.f32 -1e+09, %v2078_v46 }
  0x7a   : > { %1445 = vset.pattern.permute.xlu1 %v1693_v3  ;;  %1446 = vset.pattern.permute.xlu0 %v1693_v3  ;;  %vm2990_vm6 = vcmp.eq.s32.totalorder %v1830_v2, %v1876_v20  ;;  %v562_v48 = vsel %vm409_vm0, %v519_v22, -inf  ;;  %vm2993_vm11 = vcmp.eq.s32.totalorder %v1830_v2, %v2005_v0  ;;  %vm2997_vm3 = vcmp.eq.s32.totalorder %v1835_v4, %v2022_v11 }
  0x7b   : > { %472 = vmax.xlane.f32.xlu0 %v471_v26  ;;  %v1367_v26 = vadd.f32 -1e+09, %v2008_v6  ;;  %1447 = vset.pattern.permute.xlu2 %v1693_v3  ;;  %v518_v42 = vsel %vm2990_vm6, %v1364_v59, %v1987_v54  ;;  %v1372_v3 = vadd.f32 -1e+09, %v2104_v57  ;;  %v527_v59 = vsel %vm2992_vm8, %v1373_v27, %v2078_v46 }
  0x7c   : > { %544 = vmax.xlane.f32.xlu2 %v543_v30  ;;  %v1363_v30 = vadd.f32 -1e+09, %v1935_v37  ;;  %v578_v27 = vsel %vm409_vm0, %v527_v59, -inf  ;;  %vm2998_vm4 = vcmp.eq.s32.totalorder %v1830_v2, %v2022_v11  ;;  %vm1052_vm6 = vcmp.lt.s32.totalorder %v1855_v13, 192 }
  0x7d   : > { %v521_v55 = vsel %vm2986_vm2, %v1367_v26, %v2008_v6  ;;  %vm2996_vm2 = vcmp.eq.s32.totalorder %v1830_v2, %v2019_v10  ;;  %vm1053_vm8 = vcmp.lt.s32.totalorder %v1873_v19, 192 }
  0x7e   : > { %540 = vmax.xlane.f32.xlu1 %v539_v1  ;;  %v517_v1 = vsel %vm2985_vm1, %v1363_v30, %v1935_v37  ;;  %v520_v30 = vsel %vm2989_vm5, %v1366_v50, %v2029_v21  ;;  %v566_v26 = vsel %vm409_vm0, %v521_v55, -inf  ;;  %v1368_v50 = vadd.f32 -1e+09, %v1999_v62 }
  0x7f   : > { %v558_v9 = vsel %vm409_vm0, %v517_v1, -inf  ;;  %v567_v1 = vmax.f32 %v520_v30, %v566_v26  ;;  %v1371_v55 = vadd.f32 -1e+09, %v2052_v32  ;;  %vm2995_vm1 = vcmp.eq.s32.totalorder %v1830_v2, %v2048_v28 }
  0x80   : > { %v522_v22 = vsel %vm2993_vm11, %v1368_v50, %v1999_v62  ;;  %vm2999_vm5 = vcmp.eq.s32.totalorder %v1835_v4, %v2092_v51  ;;  %vm1055_vm11 = vcmp.lt.s32.totalorder %v1870_v18, 192 }
  0x81   : > { %v525_v26 = vsel %vm2994_vm12, %v1371_v55, %v2052_v32  ;;  %v1374_v55 = vadd.f32 -1e+09, %v2083_v49  ;;  %vm1057_vm12 = vcmp.lt.s32.totalorder %v2011_v7, 192 }
  0x83   : > { %548 = vmax.xlane.f32.xlu0 %v547_v15  ;;  %v1369_v15 = vadd.f32 -1e+09, %v2002_v63 }
  0x84   : > { %556 = vmax.xlane.f32.xlu2 %v555_v38  ;;  %v559_v38 = vmax.f32 %v516_v60, %v558_v9  ;;  %v563_v60 = vmax.f32 %v518_v42, %v562_v48  ;;  %v1370_v9 = vadd.f32 -1e+09, %v2069_v43  ;;  %v1379_v42 = vadd.f32 -1e+09, %v2146_v35 }
  0x86   : > { %552 = vmax.xlane.f32.xlu1 %v551_v56  ;;  %v523_v56 = vsel %vm2991_vm7, %v1369_v15, %v2002_v63  ;;  %v526_v15 = vsel %vm2995_vm1, %v1372_v3, %v2104_v57  ;;  %v524_v48 = vsel %vm2996_vm2, %v1370_v9, %v2069_v43  ;;  %v533_v9 = vsel %vm372_vm14, %v1379_v42, %v2146_v35 }
  0x87   : > { %v570_v30 = vsel %vm409_vm0, %v523_v56, -inf  ;;  %v579_v50 = vmax.f32 %v526_v15, %v578_v27  ;;  %v1377_v56 = vadd.f32 -1e+09, %v2118_v61  ;;  %v590_v27 = vsel %vm409_vm0, %v533_v9, -inf }
  0x88   : > { %v571_v62 = vmax.f32 %v522_v22, %v570_v30  ;;  %v1376_v22 = vadd.f32 -1e+09, %v2137_v34  ;;  %v528_v30 = vsel %vm2998_vm4, %v1374_v55, %v2083_v49  ;;  %v1383_v42 = vadd.f32 -1e+09, %v2182_v58 }
  0x89   : > { %vm3001_vm14 = vcmp.eq.s32.totalorder %v1830_v2, %v2095_v52  ;;  %vm1054_vm7 = vcmp.lt.s32.totalorder %v1852_v12, 192  ;;  %vm1056_vm1 = vcmp.lt.s32.totalorder %v1876_v20, 192  ;;  %vm1058_vm2 = vcmp.lt.s32.totalorder %v2005_v0, 192 }
  0x8a   : > { %vm2959_vm4 = vcmp.lt.s32.totalorder %v2019_v10, 192 }
  0x8b   : > { %560 = vmax.xlane.f32.xlu0 %v559_v38  ;;  %v1375_v38 = vadd.f32 -1e+09, %v2063_v39 }
  0x8c   : > { %568 = vmax.xlane.f32.xlu2 %v567_v1  ;;  %v574_v1 = vsel %vm409_vm0, %v525_v26, -inf }
  0x8d   : > { %v529_v3 = vsel %vm2997_vm3, %v1375_v38, %v2063_v39  ;;  %v575_v59 = vmax.f32 %v524_v48, %v574_v1  ;;  %v531_v39 = vsel %vm2999_vm5, %v1377_v56, %v2118_v61  ;;  %v1381_v38 = vadd.f32 -1e+09, %v2132_v31 }
  0x8e   : > { %564 = vmax.xlane.f32.xlu1 %v563_v60  ;;  %v1378_v60 = vadd.f32 -1e+09, %v2168_v53  ;;  %v582_v26 = vsel %vm409_vm0, %v529_v3, -inf  ;;  %v586_v48 = vsel %vm409_vm0, %v531_v39, -inf  ;;  %v1382_v56 = vadd.f32 -1e+09, %v2194_v33 }
  0x8f   : > { %v583_v49 = vmax.f32 %v528_v30, %v582_v26  ;;  %v295_v39 = vld [vmem:[%s2385_s20 + $0x20] sm:$0xff]  ;;  %vm2958_vm3 = vcmp.lt.s32.totalorder %v2048_v28, 192  ;;  %vm2956_vm5 = vcmp.lt.s32.totalorder %v2022_v11, 192 }
  0x90   : > { %v532_v15 = vsel %vm371_vm9, %v1378_v60, %v2168_v53  ;;  %vm3000_vm9 = vcmp.eq.s32.totalorder %v1835_v4, %v2095_v52  ;;  %v537_v60 = vsel %vm376_vm10, %v1383_v42, %v2182_v58  ;;  %v293_v58 = vld [vmem:[%s2385_s20 + $0x10] sm:$0xff]  ;;  %v300_v42 = vld [vmem:[%s2385_s20 + $0x48] sm:$0xff]  ;;  %vm1051_vm10 = vcmp.lt.s32.totalorder %v1867_v17, 192 }
  0x91   : > { %v591_v1 = vmax.f32 %v532_v15, %v590_v27  ;;  %v535_v55 = vsel %vm3000_vm9, %v1381_v38, %v2132_v31  ;;  %v536_v31 = vsel %vm375_vm13, %v1382_v56, %v2194_v33  ;;  %v292_v33 = vld [vmem:[%s2385_s20 + $0x8] sm:$0xff]  ;;  %v298_v15 = vld [vmem:[%s2385_s20 + $0x38] sm:$0xff]  ;;  %vm1098_vm13 = vcmask 7168  }
  0x92   : > { %v594_v9 = vsel %vm409_vm0, %v535_v55, -inf  ;;  %v294_v27 = vld [vmem:[%s2385_s20 + $0x18] sm:$0xff]  ;;  %v296_v38 = vld [vmem:[%s2385_s20 + $0x28] sm:$0xff]  ;;  %vm2957_vm9 = vcmp.lt.s32.totalorder %v2092_v51, 192 }
  0x93   : > { %572 = vmax.xlane.f32.xlu0 %v571_v62  ;;  %v530_v62 = vsel %vm369_vm15, %v1376_v22, %v2137_v34  ;;  %v598_v22 = vsel %vm409_vm0, %v537_v60, -inf  ;;  %v302_v55 = vld [vmem:[%s2385_s20 + $0x58] sm:$0xff]  ;;  %vm1050_vm15 = vcmp.lt.s32.totalorder %v1839_v5, 192 }
  0x94   : > { %580 = vmax.xlane.f32.xlu2 %v579_v50  ;;  %v1380_v50 = vadd.f32 -1e+09, %v2151_v40  ;;  %v587_v3 = vmax.f32 %v530_v62, %v586_v48  ;;  %v599_v26 = vmax.f32 %v536_v31, %v598_v22 }
  0x96   : > { %576 = vmax.xlane.f32.xlu1 %v575_v59  ;;  %v534_v59 = vsel %vm3001_vm14, %v1380_v50, %v2151_v40  ;;  %v291_v40 = vld [vmem:[%s2385_s20] sm:$0xff]  ;;  %v297_v50 = vld [vmem:[%s2385_s20 + $0x30] sm:$0xff] }
  0x97   : > { %v595_v30 = vmax.f32 %v534_v59, %v594_v9  ;;  %v299_v59 = vld [vmem:[%s2385_s20 + $0x40] sm:$0xff]  ;;  %v304_v9 = vld [vmem:[%s2385_s20 + $0x68] sm:$0xff] }
  0x9b   : > { %584 = vmax.xlane.f32.xlu0 %v583_v49 }
  0x9c   : > { %592 = vmax.xlane.f32.xlu2 %v591_v1  ;;  %v306_v1 = vld [vmem:[%s2385_s20 + $0x78] sm:$0xff] }
  0x9e   : > { %588 = vmax.xlane.f32.xlu1 %v587_v3 }
  0xa3   : > { %596 = vmax.xlane.f32.xlu0 %v595_v30 }
  0xa4   : > { %600 = vmax.xlane.f32.xlu2 %v599_v26  ;;  %v301_v26 = vld [vmem:[%s2385_s20 + $0x50] sm:$0xff] }
  0xb7   : > { %811 = vperm.xlu1 %1445, %v291_v40   ;;  %817 = vperm.xlu0 %1446, %v293_v58  }
  0xbc   : > { %814 = vperm.xlu2 %1447, %v292_v33  }
  0xbf   : > { %823 = vperm.xlu1 %1445, %v295_v39   ;;  %832 = vperm.xlu0 %1446, %v298_v15   ;;  %v303_v39 = vld [vmem:[%s2385_s20 + $0x60] sm:$0xff] }
  0xc4   : > { %820 = vperm.xlu2 %1447, %v294_v27  }
  0xc6   : > { %v413_v49 = vpop.xlane.xlu0 %412 }
  0xc7   : > { %826 = vperm.xlu1 %1445, %v296_v38   ;;  %v2395_v62 = vpop.xlane.xlu2 %428  ;;  %838 = vperm.xlu0 %1446, %v300_v42   ;;  %v305_v42 = vld [vmem:[%s2385_s20 + $0x70] sm:$0xff]  ;;  %s1604_s20 = sshra.s32 %s1204_s22, 4  ;;  %s1605_s20 = int_to_ptr.hbm [resolvable:$true] %s1604_s20 }
  0xc8   : > { %p1611_p7 = scmp.lt.s32.totalorder %s1605_s20, %s2913_s2 }
  0xc9   : > { %v421_v48 = vpop.xlane.xlu1 %420 }
  0xcc   : > { %856 = vperm.xlu2 %1447, %v306_v1  }
  0xce   : > { %v2400_v56 = vpop.xlane.xlu0 %416 }
  0xcf   : > { %829 = vperm.xlu1 %1445, %v297_v50   ;;  %v2402_v3 = vpop.xlane.xlu2 %432  ;;  %844 = vperm.xlu0 %1446, %v302_v55  }
  0xd1   : > { %v425_v60 = vpop.xlane.xlu1 %424 }
  0xd6   : > { %v2406_v31 = vpop.xlane.xlu0 %436 }
  0xd7   : > { %835 = vperm.xlu1 %1445, %v299_v59   ;;  %v2408_v22 = vpop.xlane.xlu2 %444  ;;  %850 = vperm.xlu0 %1446, %v304_v9  }
  0xd9   : > { %v2410_v30 = vpop.xlane.xlu1 %440 }
  0xde   : > { %v2413_v40 = vpop.xlane.xlu0 %448 }
  0xdf   : > { %841 = vperm.xlu1 %1445, %v301_v26   ;;  %v2415_v58 = vpop.xlane.xlu2 %456 }
  0xe1   : > { %v2417_v33 = vpop.xlane.xlu1 %452 }
  0xe6   : > { %v2420_v15 = vpop.xlane.xlu0 %460 }
  0xe7   : > { %847 = vperm.xlu1 %1445, %v303_v39   ;;  %v2422_v27 = vpop.xlane.xlu2 %468 }
  0xe9   : > { %v2424_v38 = vpop.xlane.xlu1 %464 }
  0xee   : > { %v2427_v1 = vpop.xlane.xlu0 %472 }
  0xef   : > { %853 = vperm.xlu1 %1445, %v305_v42   ;;  %v2429_v50 = vpop.xlane.xlu2 %544 }
  0xf0   : > { %v1003_v55 = vsub.f32 %v2429_v50, %v2400_v56 }
  0xf1   : > { %v541_v59 = vpop.xlane.xlu1 %540 }
  0xf2   : > { %v1019_v9 = vadd.f32 0.5, %v1003_v55  ;;  %v1002_v26 = vsub.f32 %v541_v59, %v413_v49  ;;  %v602_v34 = vmax.f32 %v541_v59, %v413_v49 }
  0xf4   : > { %v1035_v53 = vmax.f32 %v1019_v9, 0.0  ;;  %v1018_v39 = vadd.f32 0.5, %v1002_v26  ;;  %v3002_v26 = vld [vmem:[#allocation14_spill] sm:$0xff]  ;;  %v2449_v59 = vsub.f32 %v1858_v14, %v602_v34 }
  0xf5   : > { %v2445_v63 = vsub.f32 %v3002_v26, %v602_v34 }
  0xf6   : > { %v1083_v35 = vsel %vm1051_vm10, %v1035_v53, 0.0  ;;  %v549_v42 = vpop.xlane.xlu0 %548  ;;  %v1034_v61 = vmax.f32 %v1018_v39, 0.0  ;;  %v650_v4 = vmul.f32 1.442695, %v2449_v59 }
  0xf7   : > { %v2437_v45 = vpop.xlane.xlu2 %556  ;;  %v1142_v52 = vsel %vm1098_vm13, %v1083_v35, 0.0  ;;  %v1004_v57 = vsub.f32 %v549_v42, %v421_v48  ;;  %v604_v46 = vmax.f32 %v549_v42, %v421_v48 }
  0xf8   : > { %v1082_v55 = vsel %vm1050_vm15, %v1034_v61, 0.0  ;;  %v1006_v9 = vsub.f32 %v2437_v45, %v2395_v62  ;;  %v652_v61 = vmul.f32 1.442695, %v2445_v63 }
  0xf9   : > { %v1141_v53 = vsel %vm1098_vm13, %v1082_v55, 0.0  ;;  %v1020_v17 = vadd.f32 0.5, %v1004_v57  ;;  %v553_v49 = vpop.xlane.xlu1 %552  ;;  %v2462_v48 = vsub.f32 %v1894_v24, %v604_v46 }
  0xfa   : > { %v1143_v39 = vadd.f32 %v1142_v52, %v1141_v53  ;;  %v1022_v35 = vadd.f32 0.5, %v1006_v9  ;;  %v1005_v5 = vsub.f32 %v553_v49, %v425_v60  ;;  %1448 = vpow2.f32 %v652_v61 }
  0xfb   : > { %v1036_v8 = vmax.f32 %v1020_v17, 0.0  ;;  %v605_v17 = vmax.f32 %v553_v49, %v425_v60  ;;  %1450 = vpow2.f32 %v650_v4 }
  0xfc   : > { %v1038_v55 = vmax.f32 %v1022_v35, 0.0  ;;  %v1021_v2 = vadd.f32 0.5, %v1005_v5  ;;  %v2468_v5 = vsub.f32 %v1897_v25, %v604_v46  ;;  %v658_v46 = vmul.f32 1.442695, %v2462_v48 }
  0xfd   : > { %v1084_v26 = vsel %vm1052_vm6, %v1036_v8, 0.0  ;;  %v2479_v35 = vsub.f32 %v1955_v44, %v605_v17 }
  0xfe   : > { %v1144_v57 = vsel %vm1098_vm13, %v1084_v26, 0.0  ;;  %v561_v14 = vpop.xlane.xlu0 %560  ;;  %v1037_v9 = vmax.f32 %v1021_v2, 0.0  ;;  %v1086_v53 = vsel %vm1054_vm7, %v1038_v55, 0.0  ;;  %v2475_v2 = vsub.f32 %v1949_v41, %v605_v17 }
  0xff   : > { %v2457_v34 = vpop.xlane.xlu2 %568  ;;  %v1145_v52 = vadd.f32 %v1144_v57, %v1143_v39  ;;  %v1007_v8 = vsub.f32 %v561_v14, %v2402_v3  ;;  %v1148_v61 = vsel %vm1098_vm13, %v1086_v53, 0.0  ;;  %v660_v57 = vmul.f32 1.442695, %v2468_v5 }
 0x100   : > { %v1009_v42 = vsub.f32 %v2457_v34, %v2410_v30  ;;  %v1085_v60 = vsel %vm1053_vm8, %v1037_v9, 0.0  ;;  %v664_v44 = vmul.f32 1.442695, %v2475_v2  ;;  %1452 = vpow2.f32 %v658_v46 }
 0x101   : > { %v1146_v24 = vsel %vm1098_vm13, %v1085_v60, 0.0  ;;  %v1023_v49 = vadd.f32 0.5, %v1007_v8  ;;  %v565_v39 = vpop.xlane.xlu1 %564  ;;  %v1449_v8 = vpop.eup %1448  ;;  %v662_v60 = vmul.f32 1.442695, %v2479_v35  ;;  %1454 = vpow2.f32 %v660_v57 }
 0x102   : > { %v1147_v4 = vadd.f32 %v1146_v24, %v1145_v52  ;;  %v1025_v25 = vadd.f32 0.5, %v1009_v42  ;;  %v1008_v55 = vsub.f32 %v565_v39, %v2406_v31  ;;  %v608_v17 = vmax.f32 %v565_v39, %v2406_v31  ;;  %v1451_v42 = vpop.eup %1450 }
 0x103   : > { %v1039_v26 = vmax.f32 %v1023_v49, 0.0  ;;  %v714_v31 = vsel %vm409_vm0, %v1449_v8, 0.0  ;;  %1456 = vpow2.f32 %v664_v44 }
 0x104   : > { %v1149_v41 = vadd.f32 %v1148_v61, %v1147_v4  ;;  %v1041_v24 = vmax.f32 %v1025_v25, 0.0  ;;  %v1024_v49 = vadd.f32 0.5, %v1008_v55  ;;  %v2501_v39 = vsub.f32 %v1970_v47, %v608_v17 }
 0x105   : > { %v1087_v52 = vsel %vm1055_vm11, %v1039_v26, 0.0  ;;  %v607_v26 = vmax.f32 %v561_v14, %v2402_v3  ;;  %v715_v25 = vadd.f32 %v1451_v42, %v714_v31  ;;  %1458 = vpow2.f32 %v662_v60 }
 0x106   : > { %v1150_v53 = vsel %vm1098_vm13, %v1087_v52, 0.0  ;;  %v2494_v4 = vpop.xlane.xlu0 %572  ;;  %v1040_v18 = vmax.f32 %v1024_v49, 0.0  ;;  %v1089_v46 = vsel %vm1057_vm12, %v1041_v24, 0.0  ;;  %v603_v3 = vmax.f32 %v2429_v50, %v2400_v56 }
 0x107   : > { %v2486_v9 = vpop.xlane.xlu2 %580  ;;  %v1151_v61 = vadd.f32 %v1150_v53, %v1149_v41  ;;  %v1010_v55 = vsub.f32 %v2494_v4, %v2408_v22  ;;  %716 = vadd.xlane.f32.xlu0 %v715_v25  ;;  %v2515_v8 = vsub.f32 %v1987_v54, %v608_v17  ;;  %v2523_v56 = vsub.f32 %v1935_v37, %v607_v26  ;;  %v3003_v37 = vld [vmem:[#allocation17_spill] sm:$0xff] }
 0x108   : > { %v1088_v57 = vsel %vm1056_vm1, %v1040_v18, 0.0  ;;  %v1012_v52 = vsub.f32 %v2486_v9, %v2417_v33  ;;  %v1453_v18 = vpop.eup %1452  ;;  %v1154_v50 = vsel %vm1098_vm13, %v1089_v46, 0.0  ;;  %v676_v60 = vmul.f32 1.442695, %v2501_v39 }
 0x109   : > { %v1152_v14 = vsel %vm1098_vm13, %v1088_v57, 0.0  ;;  %v1026_v41 = vadd.f32 0.5, %v1010_v55  ;;  %v2512_v47 = vpop.xlane.xlu1 %576  ;;  %v1455_v24 = vpop.eup %1454  ;;  %v2528_v54 = vsub.f32 %v1932_v36, %v607_v26  ;;  %v2533_v25 = vsub.f32 %v1911_v29, %v603_v3 }
 0x10a   : > { %v1153_v44 = vadd.f32 %v1152_v14, %v1151_v61  ;;  %v1028_v49 = vadd.f32 0.5, %v1012_v52  ;;  %v1011_v61 = vsub.f32 %v2512_v47, %v2413_v40  ;;  %v1457_v31 = vpop.eup %1456  ;;  %v2536_v55 = vsub.f32 %v3003_v37, %v603_v3 }
 0x10b   : > { %v1042_v53 = vmax.f32 %v1026_v41, 0.0  ;;  %v1459_v57 = vpop.eup %1458  ;;  %v674_v36 = vmul.f32 1.442695, %v2515_v8  ;;  %1460 = vpow2.f32 %v676_v60  ;;  %v670_v52 = vmul.f32 1.442695, %v2528_v54 }
 0x10c   : > { %v1155_v17 = vadd.f32 %v1154_v50, %v1153_v44  ;;  %v1044_v14 = vmax.f32 %v1028_v49, 0.0  ;;  %v1027_v41 = vadd.f32 0.5, %v1011_v61  ;;  %v672_v44 = vmul.f32 1.442695, %v2523_v56 }
 0x10d   : > { %v1090_v46 = vsel %vm1058_vm2, %v1042_v53, 0.0  ;;  %v722_v53 = vsel %vm409_vm0, %v1455_v24, 0.0  ;;  %v726_v37 = vsel %vm409_vm0, %v1457_v31, 0.0  ;;  %v656_v0 = vmul.f32 1.442695, %v2536_v55 }
 0x10e   : > { %v1156_v26 = vsel %vm1098_vm13, %v1090_v46, 0.0  ;;  %v2545_v3 = vpop.xlane.xlu0 %584  ;;  %v1043_v50 = vmax.f32 %v1027_v41, 0.0  ;;  %v606_v49 = vmax.f32 %v2437_v45, %v2395_v62  ;;  %v723_v61 = vadd.f32 %v1453_v18, %v722_v53 }
 0x10f   : > { %v2520_v42 = vpop.xlane.xlu2 %592  ;;  %v1157_v29 = vadd.f32 %v1156_v26, %v1155_v17  ;;  %v727_v46 = vadd.f32 %v1459_v57, %v726_v37  ;;  %1462 = vpow2.f32 %v674_v36  ;;  %v1092_v60 = vsel %vm2958_vm3, %v1044_v14, 0.0 }
 0x110   : > { %v1091_v17 = vsel %vm2959_vm4, %v1043_v50, 0.0  ;;  %v1013_v26 = vsub.f32 %v2545_v3, %v2415_v58  ;;  %1464 = vpow2.f32 %v672_v44  ;;  %724 = vadd.xlane.f32.xlu2 %v723_v61  ;;  %v1015_v45 = vsub.f32 %v2520_v42, %v2424_v38 }
 0x111   : > { %v1158_v31 = vsel %vm1098_vm13, %v1091_v17, 0.0  ;;  %728 = vadd.xlane.f32.xlu0 %v727_v46  ;;  %1466 = vpow2.f32 %v670_v52  ;;  %v1461_v57 = vpop.eup %1460  ;;  %v654_v36 = vmul.f32 1.442695, %v2533_v25  ;;  %v1160_v14 = vsel %vm1098_vm13, %v1092_v60, 0.0  ;;  %v2567_v41 = vpop.xlane.xlu1 %588 }
 0x112   : > { %v1159_v62 = vadd.f32 %v1158_v31, %v1157_v29  ;;  %v1029_v18 = vadd.f32 0.5, %v1013_v26  ;;  %1468 = vpow2.f32 %v656_v0  ;;  %v2570_v44 = vsub.f32 %v1887_v23, %v606_v49 }
 0x113   : > { %v609_v52 = vmax.f32 %v2457_v34, %v2410_v30  ;;  %v2575_v37 = vsub.f32 %v1864_v16, %v606_v49  ;;  %v1014_v46 = vsub.f32 %v2567_v41, %v2420_v15  ;;  %v738_v0 = vsel %vm409_vm0, %v1461_v57, 0.0 }
 0x114   : > { %v1161_v50 = vadd.f32 %v1160_v14, %v1159_v62  ;;  %v1045_v53 = vmax.f32 %v1029_v18, 0.0  ;;  %1470 = vpow2.f32 %v654_v36  ;;  %v668_v26 = vmul.f32 1.442695, %v2570_v44 }
 0x115   : > { %v1463_v29 = vpop.eup %1462  ;;  %v611_v30 = vmax.f32 %v2512_v47, %v2413_v40  ;;  %v2589_v31 = vsub.f32 %v2008_v6, %v609_v52  ;;  %v1030_v62 = vadd.f32 0.5, %v1014_v46  ;;  %v666_v36 = vmul.f32 1.442695, %v2575_v37 }
 0x116   : > { %v1093_v61 = vsel %vm2956_vm5, %v1045_v53, 0.0  ;;  %v1465_v60 = vpop.eup %1464  ;;  %v2586_v34 = vpop.xlane.xlu0 %596  ;;  %v739_v18 = vadd.f32 %v1463_v29, %v738_v0  ;;  %v2595_v53 = vsub.f32 %v2029_v21, %v609_v52  ;;  %1472 = vpow2.f32 %v668_v26 }
 0x117   : > { %v2559_v24 = vpop.xlane.xlu2 %600  ;;  %v1162_v23 = vsel %vm1098_vm13, %v1093_v61, 0.0  ;;  %v1467_v17 = vpop.eup %1466  ;;  %v734_v14 = vsel %vm409_vm0, %v1465_v60, 0.0  ;;  %v1046_v40 = vmax.f32 %v1030_v62, 0.0  ;;  %v2600_v6 = vsub.f32 %v2052_v32, %v611_v30  ;;  %v3004_v62 = vld [vmem:[#allocation11_spill] sm:$0xff] }
 0x118   : > { %v1163_v16 = vadd.f32 %v1162_v23, %v1161_v50  ;;  %v1469_v57 = vpop.eup %1468  ;;  %740 = vadd.xlane.f32.xlu2 %v739_v18  ;;  %v735_v47 = vadd.f32 %v1467_v17, %v734_v14  ;;  %v1016_v50 = vsub.f32 %v2586_v34, %v2422_v27  ;;  %v680_v61 = vmul.f32 1.442695, %v2589_v31 }
 0x119   : > { %v1094_v46 = vsel %vm2957_vm9, %v1046_v40, 0.0  ;;  %v1017_v21 = vsub.f32 %v2559_v24, %v2427_v1  ;;  %v718_v52 = vsel %vm409_vm0, %v1469_v57, 0.0  ;;  %v2609_v0 = vsub.f32 %v2069_v43, %v611_v30  ;;  %v3005_v30 = vld [vmem:[#allocation12_spill] sm:$0xff] }
 0x11a   : > { %v1471_v29 = vpop.eup %1470  ;;  %736 = vadd.xlane.f32.xlu0 %v735_v47  ;;  %v1164_v60 = vsel %vm1098_vm13, %v1094_v46, 0.0  ;;  %1474 = vpow2.f32 %v666_v36  ;;  %v678_v32 = vmul.f32 1.442695, %v2595_v53  ;;  %v688_v17 = vmul.f32 1.442695, %v2600_v6 }
 0x11b   : > { %v2613_v23 = vadd.f32 %v1164_v60, %v1163_v16  ;;  %v719_v26 = vadd.f32 %v1471_v29, %v718_v52  ;;  %1476 = vpow2.f32 %v680_v61  ;;  %v612_v57 = vmax.f32 %v2486_v9, %v2417_v33  ;;  %v3006_v61 = vld [vmem:[#allocation20_spill] sm:$0xff] }
 0x11c   : > { %v1473_v14 = vpop.eup %1472  ;;  %v686_v43 = vmul.f32 1.442695, %v2609_v0  ;;  %1478 = vpow2.f32 %v678_v32  ;;  %v1031_v40 = vadd.f32 0.5, %v1015_v45  ;;  %v610_v45 = vmax.f32 %v2494_v4, %v2408_v22  ;;  %v3007_v4 = vld [vmem:[#allocation24_spill] sm:$0xff] }
 0x11d   : > { %720 = vadd.xlane.f32.xlu1 %v719_v26  ;;  %1480 = vpow2.f32 %v688_v17  ;;  %v1032_v32 = vadd.f32 0.5, %v1016_v50  ;;  %v1033_v17 = vadd.f32 0.5, %v1017_v21 }
 0x11e   : > { %1482 = vpow2.f32 %v686_v43  ;;  %v1047_v60 = vmax.f32 %v1031_v40, 0.0  ;;  %v3009_v40 = vld [vmem:[#allocation22_spill] sm:$0xff] }
 0x11f   : > { %v815_v49 = vpop.permute.xlu2 %814  ;;  %v2646_v50 = vsub.f32 %v3009_v40, %v612_v57  ;;  %v3012_v40 = vld [vmem:[#allocation23_spill] sm:$0xff] }
 0x120   : > { %vm860_vm14 = vcmp.eq.s32.totalorder %v3004_v62, %v815_v49  ;;  %vm861_vm5 = vcmp.eq.s32.totalorder %v3005_v30, %v815_v49  ;;  %v1475_v9 = vpop.eup %1474  ;;  %v730_v49 = vsel %vm409_vm0, %v1473_v14, 0.0 }
 0x121   : > { %v892_v36 = vsel %vm860_vm14, %v2533_v25, 0.0  ;;  %v893_v47 = vsel %vm861_vm5, %v2536_v55, 0.0  ;;  %v2635_v55 = vsub.f32 %v3006_v61, %v612_v57  ;;  %v1477_v52 = vpop.eup %1476  ;;  %vm2962_vm5 = vcmp.lt.s32.totalorder %v3007_v4, 192 }
 0x122   : > { %v926_v33 = vsel %vm409_vm0, %v893_v47, 0.0  ;;  %v1479_v22 = vpop.eup %1478  ;;  %v3008_v47 = vld [vmem:[#allocation18_spill] sm:$0xff]  ;;  %v742_v21 = vsel %vm409_vm0, %v1477_v52, 0.0  ;;  %v1095_v57 = vsel %vm2962_vm5, %v1047_v60, 0.0  ;;  %v1049_v61 = vmax.f32 %v1033_v17, 0.0 }
 0x123   : > { %v927_v29 = vadd.f32 %v926_v33, %v892_v36  ;;  %v1481_v43 = vpop.eup %1480  ;;  %v1048_v33 = vmax.f32 %v1032_v32, 0.0  ;;  %v1544_v32 = vld [vmem:[%s1821_s7 + $0x80] sm:$0xff]  ;;  %v690_v60 = vmul.f32 1.442695, %v2646_v50  ;;  %v1166_v17 = vsel %vm1098_vm13, %v1095_v57, 0.0 }
 0x125   : > { %928 = vadd.xlane.f32.xlu0 %v927_v29  ;;  %v692_v29 = vmul.f32 1.442695, %v2635_v55 }
 0x127   : > { %v821_v18 = vpop.permute.xlu2 %820  ;;  %1484 = vpow2.f32 %v692_v29  ;;  %v3013_v29 = vld [vmem:[#allocation25_spill] sm:$0xff] }
 0x128   : > { %vm864_vm9 = vcmp.eq.s32.totalorder %v3004_v62, %v821_v18  ;;  %vm865_vm3 = vcmp.eq.s32.totalorder %v3005_v30, %v821_v18  ;;  %v731_v18 = vadd.f32 %v1475_v9, %v730_v49  ;;  %v1483_v49 = vpop.eup %1482 }
 0x129   : > { %v812_v16 = vpop.permute.xlu1 %811  ;;  %v897_v25 = vsel %vm865_vm3, %v2475_v2, 0.0  ;;  %v896_v46 = vsel %vm864_vm9, %v2479_v35, 0.0  ;;  %v818_v36 = vpop.permute.xlu0 %817  ;;  %v2643_v35 = vsub.f32 %v3008_v47, %v610_v45  ;;  %v3011_v47 = vld [vmem:[#allocation27_spill] sm:$0xff] }
 0x12a   : > { %vm859_vm14 = vcmp.eq.s32.totalorder %v3005_v30, %v812_v16  ;;  %v934_v26 = vsel %vm409_vm0, %v897_v25, 0.0  ;;  %vm858_vm3 = vcmp.eq.s32.totalorder %v3004_v62, %v812_v16  ;;  %732 = vadd.xlane.f32.xlu1 %v731_v18  ;;  %v3010_v25 = vld [vmem:[#allocation21_spill] sm:$0xff] }
 0x12b   : > { %v891_v2 = vsel %vm859_vm14, %v2445_v63, 0.0  ;;  %v935_v14 = vadd.f32 %v934_v26, %v896_v46  ;;  %v890_v63 = vsel %vm858_vm3, %v2449_v59, 0.0  ;;  %vm2960_vm14 = vcmp.lt.s32.totalorder %v3010_v25, 192 }
 0x12c   : > { %v922_v9 = vsel %vm409_vm0, %v891_v2, 0.0  ;;  %v743_v46 = vadd.f32 %v1479_v22, %v742_v21  ;;  %v750_v59 = vsel %vm409_vm0, %v1481_v43, 0.0  ;;  %v2660_v26 = vsub.f32 %v1544_v32, %v610_v45 }
 0x12d   : > { %936 = vadd.xlane.f32.xlu2 %v935_v14  ;;  %v684_v18 = vmul.f32 1.442695, %v2643_v35  ;;  %v614_v2 = vmax.f32 %v2567_v41, %v2420_v15  ;;  %v923_v14 = vadd.f32 %v922_v9, %v890_v63  ;;  %v1096_v22 = vsel %vm2960_vm14, %v1048_v33, 0.0 }
 0x12e   : > { %vm863_vm3 = vcmp.eq.s32.totalorder %v3005_v30, %v818_v36  ;;  %744 = vadd.xlane.f32.xlu0 %v743_v46  ;;  %v1167_v41 = vadd.f32 %v1166_v17, %v2613_v23  ;;  %vm862_vm14 = vcmp.eq.s32.totalorder %v3004_v62, %v818_v36  ;;  %v1168_v33 = vsel %vm1098_vm13, %v1096_v22, 0.0  ;;  %v1545_v17 = vld [vmem:[%s1821_s7 + $0xb8] sm:$0xff] }
 0x12f   : > { %v2677_v21 = vsub.f32 %v3012_v40, %v614_v2  ;;  %v682_v63 = vmul.f32 1.442695, %v2660_v26  ;;  %1486 = vpow2.f32 %v684_v18  ;;  %v615_v9 = vmax.f32 %v2520_v42, %v2424_v38  ;;  %v1485_v38 = vpop.eup %1484  ;;  %v3014_v42 = vld [vmem:[#allocation26_spill] sm:$0xff] }
 0x130   : > { %1488 = vpow2.f32 %v690_v60  ;;  %v2688_v57 = vsub.f32 %v3013_v29, %v614_v2  ;;  %v894_v36 = vsel %vm862_vm14, %v2462_v48, 0.0  ;;  %v1169_v46 = vadd.f32 %v1168_v33, %v1167_v41  ;;  %v1546_v29 = vld [vmem:[%s1821_s7 + $0xb0] sm:$0xff] }
 0x131   : > { %v824_v16 = vpop.permute.xlu1 %823  ;;  %v833_v23 = vpop.permute.xlu0 %832  ;;  %1490 = vpow2.f32 %v682_v63  ;;  %v2697_v32 = vsub.f32 %v3014_v42, %v615_v9 }
 0x132   : > { %vm867_vm9 = vcmp.eq.s32.totalorder %v3005_v30, %v824_v16  ;;  %vm866_vm4 = vcmp.eq.s32.totalorder %v3004_v62, %v824_v16  ;;  %v895_v16 = vsel %vm863_vm3, %v2468_v5, 0.0  ;;  %924 = vadd.xlane.f32.xlu1 %v923_v14  ;;  %v698_v2 = vmul.f32 1.442695, %v2688_v57 }
 0x133   : > { %v899_v52 = vsel %vm867_vm9, %v2570_v44, 0.0  ;;  %v751_v44 = vadd.f32 %v1483_v49, %v750_v59  ;;  %v898_v45 = vsel %vm866_vm4, %v2575_v37, 0.0  ;;  %vm2961_vm9 = vcmp.lt.s32.totalorder %v3011_v47, 192 }
 0x134   : > { %v938_v43 = vsel %vm409_vm0, %v899_v52, 0.0  ;;  %v1097_v15 = vsel %vm2961_vm9, %v1049_v61, 0.0  ;;  %v930_v61 = vsel %vm409_vm0, %v895_v16, 0.0  ;;  %v613_v52 = vmax.f32 %v2545_v3, %v2415_v58 }
 0x135   : > { %752 = vadd.xlane.f32.xlu2 %v751_v44  ;;  %v939_v49 = vadd.f32 %v938_v43, %v898_v45  ;;  %v1170_v5 = vsel %vm1098_vm13, %v1097_v15, 0.0  ;;  %v700_v59 = vmul.f32 1.442695, %v2677_v21  ;;  %v931_v14 = vadd.f32 %v930_v61, %v894_v36  ;;  %v1487_v48 = vpop.eup %1486  ;;  %v3015_v44 = vld [vmem:[#allocation28_spill] sm:$0xff] }
 0x136   : > { %v2699_v18 = vadd.f32 %v1170_v5, %v1169_v46  ;;  %v1489_v60 = vpop.eup %1488  ;;  %v2703_v22 = vsub.f32 %v1545_v17, %v613_v52  ;;  %v754_v58 = vsel %vm409_vm0, %v1485_v38, 0.0  ;;  %v2707_v45 = vsub.f32 %v3015_v44, %v615_v9  ;;  %v1547_v46 = vld [vmem:[%s1821_s7 + $0xf8] sm:$0xff] }
 0x137   : > { %940 = vadd.xlane.f32.xlu0 %v939_v49  ;;  %1492 = vpow2.f32 %v700_v59  ;;  %v704_v43 = vmul.f32 1.442695, %v2697_v32  ;;  %vm873_vm3 = vcmp.eq.s32.totalorder %v3005_v30, %v833_v23  ;;  %v1491_v40 = vpop.eup %1490  ;;  %v617_v16 = vmax.f32 %v2559_v24, %v2427_v1 }
 0x138   : > { %1494 = vpow2.f32 %v698_v2  ;;  %v755_v63 = vadd.f32 %v1489_v60, %v754_v58  ;;  %v746_v9 = vsel %vm409_vm0, %v1487_v48, 0.0  ;;  %v2720_v5 = vsub.f32 %v1546_v29, %v613_v52  ;;  %v1548_v48 = vld [vmem:[%s1821_s7 + $0xf0] sm:$0xff] }
 0x139   : > { %v2681_v37 = vpop.permute.xlu1 %826  ;;  %v839_v33 = vpop.permute.xlu0 %838  ;;  %v696_v61 = vmul.f32 1.442695, %v2703_v22  ;;  %v747_v24 = vadd.f32 %v1491_v40, %v746_v9  ;;  %1496 = vpow2.f32 %v704_v43  ;;  %v2729_v52 = vsub.f32 %v1547_v46, %v617_v16 }
 0x13a   : > { %932 = vadd.xlane.f32.xlu1 %v931_v14  ;;  %vm868_vm9 = vcmp.eq.s32.totalorder %v3004_v62, %v2681_v37  ;;  %v694_v2 = vmul.f32 1.442695, %v2720_v5  ;;  %v2741_v60 = vsub.f32 %v1548_v48, %v617_v16  ;;  %v616_v44 = vmax.f32 %v2586_v34, %v2422_v27 }
 0x13b   : > { %1498 = vpow2.f32 %v696_v61  ;;  %v712_v17 = vmul.f32 1.442695, %v2729_v52 }
 0x13d   : > { %v1493_v1 = vpop.eup %1492 }
 0x13e   : > { %v1495_v59 = vpop.eup %1494  ;;  %v762_v14 = vsel %vm409_vm0, %v1493_v1, 0.0  ;;  %v1550_v1 = vld [vmem:[%s1821_s7 + $0xe0] sm:$0xff] }
 0x13f   : > { %756 = vadd.xlane.f32.xlu0 %v755_v63  ;;  %v763_v58 = vadd.f32 %v1495_v59, %v762_v14 }
 0x141   : > { %v830_v3 = vpop.permute.xlu1 %829  ;;  %v2749_v43 = vpop.permute.xlu0 %844 }
 0x142   : > { %vm870_vm4 = vcmp.eq.s32.totalorder %v3004_v62, %v830_v3  ;;  %vm871_vm14 = vcmp.eq.s32.totalorder %v3005_v30, %v830_v3  ;;  %748 = vadd.xlane.f32.xlu1 %v747_v24  ;;  %v1497_v3 = vpop.eup %1496 }
 0x143   : > { %v903_v15 = vsel %vm871_vm14, %v2501_v39, 0.0  ;;  %v902_v41 = vsel %vm870_vm4, %v2515_v8, 0.0  ;;  %vm872_vm14 = vcmp.eq.s32.totalorder %v3004_v62, %v833_v23  ;;  %v905_v39 = vsel %vm873_vm3, %v2589_v31, 0.0  ;;  %v1499_v40 = vpop.eup %1498 }
 0x144   : > { %v946_v49 = vsel %vm409_vm0, %v903_v15, 0.0  ;;  %vm869_vm4 = vcmp.eq.s32.totalorder %v3005_v30, %v2681_v37  ;;  %v702_v8 = vmul.f32 1.442695, %v2707_v45  ;;  %v904_v23 = vsel %vm872_vm14, %v2595_v53, 0.0 }
 0x145   : > { %v947_v36 = vadd.f32 %v946_v49, %v902_v41  ;;  %v901_v31 = vsel %vm869_vm4, %v2523_v56, 0.0  ;;  %v950_v38 = vsel %vm409_vm0, %v905_v39, 0.0  ;;  %vm877_vm3 = vcmp.eq.s32.totalorder %v3005_v30, %v839_v33  ;;  %v1549_v49 = vld [vmem:[%s1821_s7 + $0xe8] sm:$0xff]  ;;  %s231_s7 = scalar_lea.vmem [#allocation5], %s1347_s6  ;;  %s1606_s6 = scalar_lea.hbm %s1605_s20, 8 }
 0x146   : > { %1500 = vpow2.f32 %v702_v8  ;;  %v900_v56 = vsel %vm868_vm9, %v2528_v54, 0.0  ;;  %v942_v37 = vsel %vm409_vm0, %v901_v31, 0.0  ;;  %v951_v53 = vadd.f32 %v950_v38, %v904_v23  ;;  %s1201_s28 = sshll.u32 %s231_s7, 4  ;;  %p1607_p11 = scmp.ne.s32.totalorder %s1605_s20, %s1606_s6  ;;  %s1202_s28 = int_to_ptr.vmem [resolvable:$true] %s1201_s28 }
 0x147   : > { %948 = vadd.xlane.f32.xlu2 %v947_v36  ;;  %1502 = vpow2.f32 %v694_v2  ;;  %v710_v15 = vmul.f32 1.442695, %v2741_v60  ;;  %vm876_vm14 = vcmp.eq.s32.totalorder %v3004_v62, %v839_v33  ;;  %v909_v54 = vsel %vm877_vm3, %v2600_v6, 0.0  ;;  %p1612_p8 = scmp.lt.s32.totalorder %s1610_s10, %s1606_s6 }
 0x148   : > { %952 = vadd.xlane.f32.xlu0 %v951_v53  ;;  %v943_v41 = vadd.f32 %v942_v37, %v900_v56  ;;  %1504 = vpow2.f32 %v712_v17  ;;  %v766_v63 = vsel %vm409_vm0, %v1497_v3, 0.0  ;;  %v908_v34 = vsel %vm876_vm14, %v2609_v0, 0.0  ;;  %p1608_p13 = pnand %p1607_p11, %p1758_p9 }
 0x149   : > { %v2736_v42 = vpop.permute.xlu1 %835  ;;  %v958_v9 = vsel %vm409_vm0, %v909_v54, 0.0  ;;  %v2759_v33 = vsub.f32 %v1549_v49, %v616_v44  ;;  %1506 = vpow2.f32 %v710_v15  ;;  %v758_v29 = vsel %vm409_vm0, %v1499_v40, 0.0  ;;  %v851_v23 = vpop.permute.xlu0 %850  ;;  %p1613_p12 = por %p1612_p8, %p1611_p7 }
 0x14a   : > { %944 = vadd.xlane.f32.xlu1 %v943_v41  ;;  %v959_v39 = vadd.f32 %v958_v9, %v908_v34  ;;  %v2765_v8 = vsub.f32 %v1550_v1, %v616_v44  ;;  %vm875_vm3 = vcmp.eq.s32.totalorder %v3005_v30, %v2736_v42  ;;  %vm874_vm14 = vcmp.eq.s32.totalorder %v3004_v62, %v2736_v42  ;;  %p1609_p5 = pneg %p1608_p13 }
 0x14b   : > { %v708_v24 = vmul.f32 1.442695, %v2759_v33 }
 0x14c   : > { %v1501_v16 = vpop.eup %1500  ;;  %v706_v14 = vmul.f32 1.442695, %v2765_v8  ;;  %p1614_p0 = pnand %p1613_p12, %p1609_p5 }
 0x14d   : > { %v1503_v6 = vpop.eup %1502  ;;  %v767_v36 = vadd.f32 %v1501_v16, %v766_v63  ;;  %1508 = vpow2.f32 %v708_v24 }
 0x14e   : > { %v1505_v0 = vpop.eup %1504  ;;  %v759_v46 = vadd.f32 %v1503_v6, %v758_v29  ;;  %1510 = vpow2.f32 %v706_v14 }
 0x14f   : > { %764 = vadd.xlane.f32.xlu2 %v763_v58  ;;  %v1507_v38 = vpop.eup %1506  ;;  %v774_v56 = vsel %vm409_vm0, %v1505_v0, 0.0 }
 0x150   : > { %768 = vadd.xlane.f32.xlu0 %v767_v36  ;;  %v775_v42 = vadd.f32 %v1507_v38, %v774_v56 }
 0x151   : > { %v842_v27 = vpop.permute.xlu1 %841 }
 0x152   : > { %vm879_vm9 = vcmp.eq.s32.totalorder %v3005_v30, %v842_v27  ;;  %vm878_vm4 = vcmp.eq.s32.totalorder %v3004_v62, %v842_v27  ;;  %760 = vadd.xlane.f32.xlu1 %v759_v46 }
 0x153   : > { %v911_v61 = vsel %vm879_vm9, %v2635_v55, 0.0  ;;  %v910_v59 = vsel %vm878_vm4, %v2646_v50, 0.0  ;;  %v907_v55 = vsel %vm875_vm3, %v2643_v35, 0.0  ;;  %vm885_vm4 = vcmp.eq.s32.totalorder %v3005_v30, %v851_v23  ;;  %v1509_v44 = vpop.eup %1508 }
 0x154   : > { %v962_v31 = vsel %vm409_vm0, %v911_v61, 0.0  ;;  %v906_v50 = vsel %vm874_vm14, %v2660_v26, 0.0  ;;  %v954_v37 = vsel %vm409_vm0, %v907_v55, 0.0  ;;  %vm884_vm3 = vcmp.eq.s32.totalorder %v3004_v62, %v851_v23  ;;  %v857_v26 = vpop.permute.xlu2 %856  ;;  %v1511_v41 = vpop.eup %1510 }
 0x155   : > { %v963_v48 = vadd.f32 %v962_v31, %v910_v59  ;;  %v917_v53 = vsel %vm885_vm4, %v2697_v32, 0.0  ;;  %v955_v17 = vadd.f32 %v954_v37, %v906_v50  ;;  %v916_v54 = vsel %vm884_vm3, %v2707_v45, 0.0 }
 0x156   : > { %vm889_vm14 = vcmp.eq.s32.totalorder %v3005_v30, %v857_v26  ;;  %v770_v40 = vsel %vm409_vm0, %v1509_v44, 0.0  ;;  %vm880_vm4 = vcmp.eq.s32.totalorder %v3004_v62, %v2749_v43 }
 0x157   : > { %960 = vadd.xlane.f32.xlu2 %v959_v39  ;;  %v771_v16 = vadd.f32 %v1511_v41, %v770_v40 }
 0x158   : > { %964 = vadd.xlane.f32.xlu0 %v963_v48 }
 0x159   : > { %v848_v2 = vpop.permute.xlu1 %847 }
 0x15a   : > { %vm883_vm9 = vcmp.eq.s32.totalorder %v3005_v30, %v848_v2  ;;  %vm882_vm5 = vcmp.eq.s32.totalorder %v3004_v62, %v848_v2  ;;  %956 = vadd.xlane.f32.xlu1 %v955_v17 }
 0x15b   : > { %v915_v35 = vsel %vm883_vm9, %v2677_v21, 0.0  ;;  %v914_v58 = vsel %vm882_vm5, %v2688_v57, 0.0  ;;  %v974_v21 = vsel %vm409_vm0, %v917_v53, 0.0  ;;  %vm888_vm9 = vcmp.eq.s32.totalorder %v3004_v62, %v857_v26 }
 0x15c   : > { %v970_v3 = vsel %vm409_vm0, %v915_v35, 0.0  ;;  %v975_v32 = vadd.f32 %v974_v21, %v916_v54  ;;  %v921_v57 = vsel %vm889_vm14, %v2729_v52, 0.0  ;;  %vm881_vm5 = vcmp.eq.s32.totalorder %v3005_v30, %v2749_v43 }
 0x15d   : > { %v971_v15 = vadd.f32 %v970_v3, %v914_v58  ;;  %v913_v45 = vsel %vm881_vm5, %v2703_v22, 0.0  ;;  %v920_v63 = vsel %vm888_vm9, %v2741_v60, 0.0  ;;  %v982_v27 = vsel %vm409_vm0, %v921_v57, 0.0 }
 0x15e   : > { %v983_v9 = vadd.f32 %v982_v27, %v920_v63  ;;  %v912_v52 = vsel %vm880_vm4, %v2720_v5, 0.0  ;;  %v966_v49 = vsel %vm409_vm0, %v913_v45, 0.0 }
 0x15f   : > { %776 = vadd.xlane.f32.xlu2 %v775_v42  ;;  %v967_v6 = vadd.f32 %v966_v49, %v912_v52 }
 0x160   : > { %972 = vadd.xlane.f32.xlu0 %v971_v15 }
 0x161   : > { %v854_v34 = vpop.permute.xlu1 %853 }
 0x162   : > { %772 = vadd.xlane.f32.xlu1 %v771_v16  ;;  %vm887_vm3 = vcmp.eq.s32.totalorder %v3005_v30, %v854_v34  ;;  %vm886_vm14 = vcmp.eq.s32.totalorder %v3004_v62, %v854_v34 }
 0x163   : > { %v919_v43 = vsel %vm887_vm3, %v2759_v33, 0.0  ;;  %v918_v22 = vsel %vm886_vm14, %v2765_v8, 0.0 }
 0x164   : > { %v978_v60 = vsel %vm409_vm0, %v919_v43, 0.0  ;;  %vm3020_vm0 = vcmp.lt.s32.totalorder %v2019_v10, 192 }
 0x165   : > { %v979_v29 = vadd.f32 %v978_v60, %v918_v22 }
 0x167   : > { %976 = vadd.xlane.f32.xlu2 %v975_v32 }
 0x168   : > { %984 = vadd.xlane.f32.xlu0 %v983_v9 }
 0x16a   : > { %968 = vadd.xlane.f32.xlu1 %v967_v6 }
 0x172   : > { %980 = vadd.xlane.f32.xlu1 %v979_v29 }
 0x17a   : > { %1172 = vadd.xlane.f32.xlu1 %v2699_v18  ;;  %v717_v5 = vpop.xlane.xlu0 %716 }
 0x17b   : > { %1512 = vlog2.f32 %v717_v5 }
 0x181   : > { %v1513_v38 = vpop.eup %1512 }
 0x182   : > { %v779_v48 = vmul.f32 0.6931472, %v1513_v38 }
 0x183   : > { %v725_v61 = vpop.xlane.xlu2 %724 }
 0x184   : > { %v729_v36 = vpop.xlane.xlu0 %728  ;;  %1514 = vlog2.f32 %v725_v61 }
 0x18a   : > { %v1515_v18 = vpop.eup %1514 }
 0x18b   : > { %v741_v0 = vpop.xlane.xlu2 %740  ;;  %v783_v56 = vmul.f32 0.6931472, %v1515_v18 }
 0x18d   : > { %v737_v39 = vpop.xlane.xlu0 %736 }
 0x190   : > { %v721_v30 = vpop.xlane.xlu1 %720 }
 0x191   : > { %1516 = vlog2.f32 %v721_v30 }
 0x192   : > { %1518 = vlog2.f32 %v729_v36 }
 0x193   : > { %1520 = vlog2.f32 %v737_v39 }
 0x197   : > { %v1517_v55 = vpop.eup %1516 }
 0x198   : > { %v929_v1 = vpop.xlane.xlu0 %928  ;;  %v781_v50 = vmul.f32 0.6931472, %v1517_v55  ;;  %v1519_v17 = vpop.eup %1518 }
 0x199   : > { %v1521_v44 = vpop.eup %1520  ;;  %v785_v15 = vmul.f32 0.6931472, %v1519_v17 }
 0x19a   : > { %v987_v35 = vsub.f32 %v781_v50, %v929_v1  ;;  %v789_v27 = vmul.f32 0.6931472, %v1521_v44 }
 0x19c   : > { %v1067_v21 = vsel %vm1051_vm10, %v987_v35, 0.0  ;;  %vm3021_vm10 = vcmp.lt.s32.totalorder %v2048_v28, 192 }
 0x19d   : > { %v733_v24 = vpop.xlane.xlu1 %732  ;;  %v1100_v45 = vsel %vm1098_vm13, %v1067_v21, 0.0 }
 0x19e   : > { %1522 = vlog2.f32 %v733_v24 }
 0x19f   : > { %1524 = vlog2.f32 %v741_v0 }
 0x1a0   : > { %v937_v46 = vpop.xlane.xlu2 %936 }
 0x1a1   : > { %v745_v62 = vpop.xlane.xlu0 %744  ;;  %v989_v16 = vsub.f32 %v785_v15, %v937_v46 }
 0x1a2   : > { %1526 = vlog2.f32 %v745_v62 }
 0x1a3   : > { %v1069_v13 = vsel %vm1053_vm8, %v989_v16, 0.0  ;;  %vm3025_vm8 = vcmp.lt.s32.totalorder %v3011_v47, 192 }
 0x1a4   : > { %v1523_v40 = vpop.eup %1522  ;;  %v1104_v29 = vsel %vm1098_vm13, %v1069_v13, 0.0 }
 0x1a5   : > { %v925_v33 = vpop.xlane.xlu1 %924  ;;  %v787_v34 = vmul.f32 0.6931472, %v1523_v40  ;;  %v1525_v22 = vpop.eup %1524 }
 0x1a6   : > { %v986_v37 = vsub.f32 %v779_v48, %v925_v33  ;;  %v791_v36 = vmul.f32 0.6931472, %v1525_v22 }
 0x1a8   : > { %v753_v8 = vpop.xlane.xlu2 %752  ;;  %v1066_v3 = vsel %vm1050_vm15, %v986_v37, 0.0  ;;  %v1527_v5 = vpop.eup %1526  ;;  %vm3022_vm15 = vcmp.lt.s32.totalorder %v2092_v51, 192 }
 0x1a9   : > { %v1099_v32 = vsel %vm1098_vm13, %v1066_v3, 0.0  ;;  %v793_v33 = vmul.f32 0.6931472, %v1527_v5 }
 0x1aa   : > { %v941_v59 = vpop.xlane.xlu0 %940  ;;  %v1101_v9 = vadd.f32 %v1100_v45, %v1099_v32 }
 0x1ab   : > { %v990_v6 = vsub.f32 %v787_v34, %v941_v59 }
 0x1ad   : > { %v933_v31 = vpop.xlane.xlu1 %932  ;;  %v1070_v39 = vsel %vm1054_vm7, %v990_v6, 0.0  ;;  %vm3024_vm7 = vcmp.lt.s32.totalorder %v3007_v4, 192 }
 0x1ae   : > { %v988_v42 = vsub.f32 %v783_v56, %v933_v31  ;;  %v1106_v62 = vsel %vm1098_vm13, %v1070_v39, 0.0 }
 0x1b0   : > { %v1068_v41 = vsel %vm1052_vm6, %v988_v42, 0.0  ;;  %vm3023_vm6 = vcmp.lt.s32.totalorder %v2022_v11, 192 }
 0x1b1   : > { %v1102_v63 = vsel %vm1098_vm13, %v1068_v41, 0.0 }
 0x1b2   : > { %v757_v23 = vpop.xlane.xlu0 %756  ;;  %v1103_v49 = vadd.f32 %v1102_v63, %v1101_v9 }
 0x1b4   : > { %v1105_v61 = vadd.f32 %v1104_v29, %v1103_v49 }
 0x1b5   : > { %v749_v2 = vpop.xlane.xlu1 %748 }
 0x1b6   : > { %1528 = vlog2.f32 %v749_v2  ;;  %v1107_v59 = vadd.f32 %v1106_v62, %v1105_v61 }
 0x1b7   : > { %1530 = vlog2.f32 %v753_v8 }
 0x1b8   : > { %1532 = vlog2.f32 %v757_v23 }
 0x1ba   : > { %v949_v14 = vpop.xlane.xlu2 %948 }
 0x1bb   : > { %v953_v53 = vpop.xlane.xlu0 %952  ;;  %v992_v24 = vsub.f32 %v791_v36, %v949_v14 }
 0x1bc   : > { %v1529_v0 = vpop.eup %1528  ;;  %v993_v2 = vsub.f32 %v793_v33, %v953_v53 }
 0x1bd   : > { %v945_v26 = vpop.xlane.xlu1 %944  ;;  %v795_v31 = vmul.f32 0.6931472, %v1529_v0  ;;  %v1072_v12 = vsel %vm1056_vm1, %v992_v24, 0.0  ;;  %v1531_v56 = vpop.eup %1530 }
 0x1be   : > { %v991_v43 = vsub.f32 %v789_v27, %v945_v26  ;;  %v1110_v8 = vsel %vm1098_vm13, %v1072_v12, 0.0  ;;  %v797_v14 = vmul.f32 0.6931472, %v1531_v56  ;;  %v1073_v37 = vsel %vm1057_vm12, %v993_v2, 0.0  ;;  %v1533_v42 = vpop.eup %1532 }
 0x1bf   : > { %v1112_v58 = vsel %vm1098_vm13, %v1073_v37, 0.0  ;;  %v799_v26 = vmul.f32 0.6931472, %v1533_v42 }
 0x1c0   : > { %v1071_v1 = vsel %vm1055_vm11, %v991_v43, 0.0  ;;  %vm3026_vm11 = vcmp.lt.s32.totalorder %v3010_v25, 192 }
 0x1c1   : > { %v1108_v46 = vsel %vm1098_vm13, %v1071_v1, 0.0 }
 0x1c2   : > { %v765_v57 = vpop.xlane.xlu2 %764  ;;  %v1109_v55 = vadd.f32 %v1108_v46, %v1107_v59 }
 0x1c3   : > { %v769_v52 = vpop.xlane.xlu0 %768  ;;  %1534 = vlog2.f32 %v765_v57 }
 0x1c4   : > { %v1111_v50 = vadd.f32 %v1110_v8, %v1109_v55 }
 0x1c5   : > { %v761_v60 = vpop.xlane.xlu1 %760 }
 0x1c6   : > { %1536 = vlog2.f32 %v761_v60  ;;  %v1113_v44 = vadd.f32 %v1112_v58, %v1111_v50 }
 0x1c7   : > { %1538 = vlog2.f32 %v769_v52 }
 0x1c9   : > { %v1535_v15 = vpop.eup %1534 }
 0x1ca   : > { %v961_v19 = vpop.xlane.xlu2 %960  ;;  %v803_v32 = vmul.f32 0.6931472, %v1535_v15 }
 0x1cb   : > { %v965_v18 = vpop.xlane.xlu0 %964  ;;  %v995_v20 = vsub.f32 %v797_v14, %v961_v19 }
 0x1cc   : > { %v996_v41 = vsub.f32 %v799_v26, %v965_v18  ;;  %v1537_v40 = vpop.eup %1536 }
 0x1cd   : > { %v957_v38 = vpop.xlane.xlu1 %956  ;;  %v1075_v21 = vsel %vm3020_vm0, %v995_v20, 0.0  ;;  %v1539_v57 = vpop.eup %1538  ;;  %v801_v63 = vmul.f32 0.6931472, %v1537_v40 }
 0x1ce   : > { %v994_v48 = vsub.f32 %v795_v31, %v957_v38  ;;  %v1116_v16 = vsel %vm1098_vm13, %v1075_v21, 0.0  ;;  %v1076_v34 = vsel %vm3021_vm10, %v996_v41, 0.0  ;;  %v805_v49 = vmul.f32 0.6931472, %v1539_v57 }
 0x1cf   : > { %v1118_v10 = vsel %vm1098_vm13, %v1076_v34, 0.0 }
 0x1d0   : > { %v1074_v23 = vsel %vm1058_vm2, %v994_v48, 0.0 }
 0x1d1   : > { %v1114_v53 = vsel %vm1098_vm13, %v1074_v23, 0.0 }
 0x1d2   : > { %v777_v17 = vpop.xlane.xlu2 %776  ;;  %v1115_v7 = vadd.f32 %v1114_v53, %v1113_v44 }
 0x1d3   : > { %1540 = vlog2.f32 %v777_v17  ;;  %v973_v54 = vpop.xlane.xlu0 %972 }
 0x1d4   : > { %v1117_v27 = vadd.f32 %v1116_v16, %v1115_v7  ;;  %v998_v9 = vsub.f32 %v803_v32, %v973_v54 }
 0x1d5   : > { %v773_v3 = vpop.xlane.xlu1 %772 }
 0x1d6   : > { %1542 = vlog2.f32 %v773_v3  ;;  %v1119_v22 = vadd.f32 %v1118_v10, %v1117_v27  ;;  %v1078_v60 = vsel %vm3022_vm15, %v998_v9, 0.0 }
 0x1d7   : > { %v1122_v30 = vsel %vm1098_vm13, %v1078_v60, 0.0 }
 0x1d9   : > { %v1541_v45 = vpop.eup %1540 }
 0x1da   : > { %v977_v13 = vpop.xlane.xlu2 %976  ;;  %v809_v43 = vmul.f32 0.6931472, %v1541_v45 }
 0x1db   : > { %v999_v5 = vsub.f32 %v805_v49, %v977_v13  ;;  %v985_v61 = vpop.xlane.xlu0 %984 }
 0x1dc   : > { %v1543_v36 = vpop.eup %1542  ;;  %v1001_v24 = vsub.f32 %v809_v43, %v985_v61 }
 0x1dd   : > { %v969_v52 = vpop.xlane.xlu1 %968  ;;  %v807_v1 = vmul.f32 0.6931472, %v1543_v36  ;;  %v1079_v0 = vsel %vm3024_vm7, %v999_v5, 0.0 }
 0x1de   : > { %v997_v6 = vsub.f32 %v801_v63, %v969_v52  ;;  %v1124_v46 = vsel %vm1098_vm13, %v1079_v0, 0.0  ;;  %v1081_v33 = vsel %vm3025_vm8, %v1001_v24, 0.0 }
 0x1df   : > { %v1128_v18 = vsel %vm1098_vm13, %v1081_v33, 0.0 }
 0x1e0   : > { %v1077_v29 = vsel %vm3023_vm6, %v997_v6, 0.0 }
 0x1e1   : > { %v1120_v28 = vsel %vm1098_vm13, %v1077_v29, 0.0 }
 0x1e2   : > { %v1121_v39 = vadd.f32 %v1120_v28, %v1119_v22 }
 0x1e4   : > { %v1123_v19 = vadd.f32 %v1122_v30, %v1121_v39 }
 0x1e5   : > { %v981_v62 = vpop.xlane.xlu1 %980 }
 0x1e6   : > { %v1000_v51 = vsub.f32 %v807_v1, %v981_v62  ;;  %v1125_v11 = vadd.f32 %v1124_v46, %v1123_v19 }
 0x1e8   : > { %v1080_v59 = vsel %vm3026_vm11, %v1000_v51, 0.0 }
 0x1e9   : > { %v1126_v31 = vsel %vm1098_vm13, %v1080_v59, 0.0 }
 0x1ea   : > { %v1127_v38 = vadd.f32 %v1126_v31, %v1125_v11 }
 0x1ec   : > { %v1129_v4 = vadd.f32 %v1128_v18, %v1127_v38 }
 0x1ed   : > { %v1173_v12 = vpop.xlane.xlu1 %1172 }
 0x1ee   : > { %1130 = vadd.xlane.f32.xlu2 %v1129_v4  ;;  %v1174_v55 = vrot.slane %v1173_v12, 4 }
 0x1f0   : > { %v1175_v2 = vadd.f32 %v1174_v55, %v1173_v12 }
 0x1f2   : > { %v1176_v48 = vrot.slane %v1175_v2, 2 }
 0x1f4   : > { %v1177_v14 = vadd.f32 %v1176_v48, %v1175_v2 }
 0x1f6   : > { %v1178_v37 = vrot.slane %v1177_v14, 1 }
 0x1f8   : > { %v1179_v42 = vadd.f32 %v1178_v37, %v1177_v14 }
 0x261   : > { %v1131_v56 = vpop.xlane.xlu2 %1130 }
 0x262   : > { %v1132_v8 = vrot.slane %v1131_v56, 4 }
 0x264   : > { %v1133_v47 = vadd.f32 %v1132_v8, %v1131_v56 }
 0x266   : > { %v1134_v50 = vrot.slane %v1133_v47, 2 }
 0x268   : > { %v1135_v25 = vadd.f32 %v1134_v50, %v1133_v47 }
 0x26a   : > { %v1136_v35 = vrot.slane %v1135_v25, 1 }
 0x26c   : > { %v1137_v23 = vadd.f32 %v1136_v35, %v1135_v25 }
 0x26e   : > { %1393 = vpush %v1137_v23 }
 0x26f   : > { %1395 = vpush %v1179_v42 }
 0x29f   : > { %s1394_s16 = spop %1393 }
 0x2a0   : > { %v1139_v17 = vstv %s1394_s16  ;;  %s1396_s17 = spop %1395 }
 0x2a1   : > { %1140 = vst [vmem:[%s231_s7] sm:$0xff] %v1139_v17  ;;  %v1181_v20 = vstv %s1396_s17 }
 0x2a2   : > { %1182 = vst [vmem:[%s238_s29] sm:$0xff] %v1181_v20 }
 0x2a3   : > { %1617 = shalt.err (!%p1614_p0)
}
 0x2a4   : > { %1398 = dma.vmem_to_hbm [thread:$0]  (%p1758_p9), %s1202_s28, 128, %s1204_s22, %s1184_s19  }
 0x2a5   : > { %s1189_s29 = scalar_lea.sflag [#allocation7], %s1817_s26  ;;  %s1632_s30 = sshra.s32 %s2866_s5, 4  ;;  %s1633_s30 = int_to_ptr.hbm [resolvable:$true] %s1632_s30 }
 0x2a6   : > { %s1634_s4 = scalar_lea.hbm %s1633_s30, 8  ;;  %s1638_s17 = scalar_lea.hbm %s2914_s3, 16 }
 0x2a7   : > { %p1635_p1 = scmp.ne.s32.totalorder %s1633_s30, %s1634_s4  ;;  %p1639_p4 = scmp.lt.s32.totalorder %s1633_s30, %s2914_s3 }
 0x2a8   : > { %p1640_p6 = scmp.lt.s32.totalorder %s1638_s17, %s1634_s4 }
 0x2a9   : > { %p1636_p2 = pnand %p1635_p1, %p1758_p9 }
 0x2aa   : > { %p1641_p11 = por %p1640_p6, %p1639_p4 }
 0x2ab   : > { %p1637_p3 = pneg %p1636_p2 }
 0x2ad   : > { %p1642_p13 = pnand %p1641_p11, %p1637_p3 }
 0x2af   : > { %1645 = shalt.err (!%p1642_p13)
}
 0x2b0   : > { %1399 = dma.vmem_to_hbm [thread:$0]  (%p1758_p9), %s2864_s25, 128, %s2866_s5, %s1189_s29  }
 0x2b1 PF: > { %s1229_s26 = sand.u32 1, %s1676_s12   ;;  %p3027_p5 = scmp.ge.s32.totalorder %s1688_s15, 2 }
 0x2b2   : > { %s1230_s28 = scalar_lea.sflag [#allocation4], %s1229_s26 }
 0x2b3   : > { %p1403_p7 = pnand %p3027_p5, %p1762_p10 }
 0x2b5   : > { %p1404_p8 = pneg %p1403_p7 }
 0x2b7   : > { %1667 = dma.done.wait (%p1404_p8), %s1230_s28, 128  }
 0x2b8   : > { %1669 = vsyncadd (%p1404_p8), %s1230_s28, 4294967168  ;;  %s1240_s22 = scalar_lea.sflag [#allocation7], %s1229_s26 }
 0x2b9   : > { %1671 = dma.done.wait (%p1404_p8), %s1240_s22, 128  }
 0x2ba   : > { %1673 = vsyncadd (%p1404_p8), %s1240_s22, 4294967168  ;;  %p20_p9 = scmp.ge.s32.totalorder %s1739_s18, 4   ;;  %s3028_s12 = smov %s1680_s13 }
 0x2bb   : > { %s3029_s13 = smov %s1684_s14  ;;  %s3030_s14 = smov %s1751_s21 }
 0x2bc   : > { %s3031_s15 = smov %s1739_s18  ;;  %22 = sbr.rel (!%p20_p9) target bundleno = 7 (0x7), region = 93 }
 0x2c1   :  { %1246 = vsyncpa [#allocation3], 1 }
 0x2c2   :  { %1248 = vsyncpa [#allocation3 + $0x1], 1 }
 0x2c3   :  { %1249 = vsyncpa [#allocation4], 1 }
 0x2c4   :  { %1251 = vsyncpa [#allocation4 + $0x1], 1 }
 0x2c5   :  { %1252 = vsyncpa [#allocation7], 1 }
 0x2c6   :  { %1254 = vsyncpa [#allocation7 + $0x1], 1 }

</bundles_post_ra>
